<compile_context>
chip_gen: v5e
topology: v5e:2x2
jax: 0.10.0
libtpu: 0.0.40
codegen_flags: <defaults>
</compile_context>

<pallas_src>
import jax
import jax.numpy as jnp
from jax.experimental import pallas as pl
from jax.experimental.pallas import tpu as pltpu


# ----------------------------- fused kernel -------------------------------- #

def _make_fused_kernel(n_branches):
    """One batch tile: all branches + bilinear product + classifier head.

    Ref order: [x_i, w1_i, b1_i, w2_i, b2_i] * n_branches, wfc, bfc, out.
    Dropout layers are identity in eval mode; BN (eval) is pre-folded into w/b.
    """

    def kernel(*refs):
        wfc_ref = refs[5 * n_branches]
        bfc_ref = refs[5 * n_branches + 1]
        out_ref = refs[5 * n_branches + 2]

        prod = None
        for i in range(n_branches):
            x_ref, w1_ref, b1_ref, w2_ref, b2_ref = refs[5 * i:5 * i + 5]
            # In-kernel bf16 cast of x: cheap VPU work hidden under the MXU,
            # avoids a separate XLA cast pass and extra HBM traffic.
            x = x_ref[...].astype(w1_ref.dtype)
            # fc1: Linear (+ folded BN) + ReLU   (bf16 MXU, f32 accumulate)
            h = jnp.dot(x, w1_ref[...],
                        preferred_element_type=jnp.float32) + b1_ref[...]
            h = jnp.maximum(h, 0.0)
            # fc2: Linear (+ folded BN) + ReLU
            e = jnp.dot(h.astype(w2_ref.dtype), w2_ref[...],
                        preferred_element_type=jnp.float32) + b2_ref[...]
            e = jnp.maximum(e, 0.0)
            # bilinear elementwise product across branches (stays in VMEM)
            prod = e if prod is None else prod * e

        # classifier head on the lane-dense padded output
        logits = jnp.dot(prod.astype(wfc_ref.dtype), wfc_ref[...],
                         preferred_element_type=jnp.float32) + bfc_ref[...]
        out_ref[...] = logits.astype(out_ref.dtype)

    return kernel


# --------------------------- parameter folding ----------------------------- #

def _fold_bn_into_linear(w, b, gamma, beta, mean, var, eps=1e-5):
    """BatchNorm1d(eval) after Linear -> scaled Linear."""
    scale = gamma / jnp.sqrt(var + eps)          # (1, E)
    w_f = w * scale                              # column scale
    b_f = b * scale + (beta - mean * scale)
    return w_f, b_f


def _round_up(x, m):
    return ((x + m - 1) // m) * m


def prepare_kernel_params(params, compute_dtype=jnp.bfloat16):
    """Fold BN, cast matmul operands to bf16, pad Wfc to a 128-lane multiple.

    Call ONCE at model-load time and reuse the result across forward passes
    (re-folding ~MiBs of weights per call would rival the kernel runtime).
    """
    branches = []
    for p in params["branches"]:
        w1, b1 = _fold_bn_into_linear(p["w1"], p["b1"], p["g1"], p["be1"],
                                      p["m1"], p["v1"])
        w2, b2 = _fold_bn_into_linear(p["w2"], p["b2"], p["g2"], p["be2"],
                                      p["m2"], p["v2"])
        branches.append(dict(w1=w1.astype(compute_dtype),
                             b1=b1.astype(jnp.float32),
                             w2=w2.astype(compute_dtype),
                             b2=b2.astype(jnp.float32)))
    E, C = params["wfc"].shape
    c_pad = _round_up(max(C, 128), 128)
    wfc = jnp.zeros((E, c_pad), jnp.float32).at[:, :C].set(params["wfc"])
    bfc = jnp.zeros((1, c_pad), jnp.float32).at[:, :C].set(params["bfc"])
    return dict(branches=branches,
                wfc=wfc.astype(compute_dtype),
                bfc=bfc.astype(jnp.float32),
                embed_dim=int(E), num_classes=int(C), c_pad=int(c_pad))


# ----------------------------- VMEM budgeting ------------------------------- #

def _vmem_cap_bytes():
    """Per-generation VMEM budget with headroom for Mosaic internal scratch.

    v5e/v6e: 128 MiB physical -> ~112 MiB budget; v7x: 64 MiB -> ~56 MiB.
    """
    try:
        cap = int(pltpu.get_tpu_info().vmem_capacity_bytes)
    except Exception:
        cap = 64 << 20      # assume the smallest (v7x) if the query fails
    return (cap * 7) // 8   # ~12.5% headroom


def _vmem_budget_bytes(net_dims, embed_dim, c_pad, tm, weight_buffers):
    """Explicit VMEM request: resident weights + pipelined x/out tiles + temps."""
    bf16, f32 = 2, 4
    n = len(net_dims)
    weights = weight_buffers * (sum(nd * embed_dim for nd in net_dims) * bf16
                                + n * embed_dim * embed_dim * bf16
                                + embed_dim * c_pad * bf16)
    biases = weight_buffers * (2 * n * embed_dim + c_pad) * f32
    x_tiles = 2 * sum(tm * nd for nd in net_dims) * f32     # double-buffered
    out_tiles = 2 * tm * c_pad * f32                        # double-buffered
    acts = 4 * tm * embed_dim * f32                         # h / e / prod / temps
    est = int(1.25 * (weights + biases + x_tiles + out_tiles + acts)) + (2 << 20)
    return int(min(max(est, 16 << 20), _vmem_cap_bytes()))


def _choose_tm(batch, vmem_cap):
    """Batch tile: multiple of 16 (bf16 sublane pack), >=2 grid steps when the
    batch allows (so both v7x TensorCores get work), big on VMEM-rich chips."""
    tm_target = 512 if vmem_cap >= (96 << 20) else 256
    half = -(-batch // 2)                       # ceil(B / 2)
    return min(tm_target, max(16, _round_up(half, 16)))


# ------------------------------- wrapper ------------------------------------ #

def bilinear_two_layer(feats, prepared, *, tm=None, out_dtype=jnp.float32):
    """Fused forward: logits = fc(prod_i relu(bn2(fc2(relu(bn1(fc1(x_i)))))))."""
    n = len(feats)
    B = feats[0].shape[0]
    E = prepared["embed_dim"]
    C = prepared["num_classes"]
    c_pad = prepared["c_pad"]
    net_dims = [int(x.shape[1]) for x in feats]

    vmem_cap = _vmem_cap_bytes()
    if tm is None:
        tm = _choose_tm(B, vmem_cap)
    tm = max(16, _round_up(min(int(tm), max(B, 1)), 16))

    # Pad the batch to a multiple of tm with zero rows (never fall back to a
    # single giant / misaligned tile); slice the output back afterwards.
    B_pad = _round_up(B, tm)
    if B_pad != B:
        feats = [jnp.pad(x, ((0, B_pad - B), (0, 0))) for x in feats]
    grid = (B_pad // tm,)

    def run(single_buffer_weights):
        def resident(shape):
            # Constant index_map -> DMA'd once; single buffer avoids wasting
            # a second copy of every weight in VMEM.
            if single_buffer_weights:
                return pl.BlockSpec(shape, lambda i: (0, 0),
                                    pipeline_mode=pl.Buffered(1))
            return pl.BlockSpec(shape, lambda i: (0, 0))

        args, in_specs = [], []
        for x, bp, nd in zip(feats, prepared["branches"], net_dims):
            args += [x, bp["w1"], bp["b1"], bp["w2"], bp["b2"]]
            in_specs += [
                pl.BlockSpec((tm, nd), lambda i: (i, 0)),   # x: tiled over batch
                resident((nd, E)),                          # W1: resident
                resident((1, E)),                           # b1 (BN folded)
                resident((E, E)),                           # W2: resident
                resident((1, E)),                           # b2 (BN folded)
            ]
        args += [prepared["wfc"], prepared["bfc"]]
        in_specs += [resident((E, c_pad)), resident((1, c_pad))]
        out_spec = pl.BlockSpec((tm, c_pad), lambda i: (i, 0))

        return pl.pallas_call(
            _make_fused_kernel(n),
            out_shape=jax.ShapeDtypeStruct((B_pad, c_pad), out_dtype),
            grid_spec=pltpu.PrefetchScalarGridSpec(
                num_scalar_prefetch=0,
                grid=grid,
                in_specs=in_specs,
                out_specs=out_spec),
            compiler_params=pltpu.CompilerParams(
                dimension_semantics=("parallel",),   # split batch tiles across TCs
                vmem_limit_bytes=_vmem_budget_bytes(
                    net_dims, E, c_pad, tm,
                    weight_buffers=1 if single_buffer_weights else 2)),
        )(*args)

    try:
        out_padded = run(single_buffer_weights=True)
    except Exception:
        # Fallback for jax versions without BlockSpec pipeline_mode support:
        # identical math, just double-buffered (more VMEM-hungry) weights.
        out_padded = run(single_buffer_weights=False)

    return out_padded[:B, :C]


# -------------------------- deterministic params ---------------------------- #

def init_params(key, net_dim, embed_dim, num_classes):
    branches = []
    for ndim in net_dim:
        k = jax.random.split(key, 13)
        key = k[-1]
        branches.append(dict(
            w1=0.05 * jax.random.normal(k[0], (ndim, embed_dim), jnp.float32),
            b1=0.05 * jax.random.normal(k[1], (1, embed_dim), jnp.float32),
            g1=1.0 + 0.1 * jax.random.normal(k[2], (1, embed_dim), jnp.float32),
            be1=0.1 * jax.random.normal(k[3], (1, embed_dim), jnp.float32),
            m1=0.1 * jax.random.normal(k[4], (1, embed_dim), jnp.float32),
            v1=0.5 + jnp.abs(jax.random.normal(k[5], (1, embed_dim), jnp.float32)),
            w2=0.05 * jax.random.normal(k[6], (embed_dim, embed_dim), jnp.float32),
            b2=0.05 * jax.random.normal(k[7], (1, embed_dim), jnp.float32),
            g2=1.0 + 0.1 * jax.random.normal(k[8], (1, embed_dim), jnp.float32),
            be2=0.1 * jax.random.normal(k[9], (1, embed_dim), jnp.float32),
            m2=0.1 * jax.random.normal(k[10], (1, embed_dim), jnp.float32),
            v2=0.5 + jnp.abs(jax.random.normal(k[11], (1, embed_dim), jnp.float32)),
        ))
    kfc_w, kfc_b = jax.random.split(key)
    wfc = 0.05 * jax.random.normal(kfc_w, (embed_dim, num_classes), jnp.float32)
    bfc = 0.05 * jax.random.normal(kfc_b, (1, num_classes), jnp.float32)
    return dict(branches=branches, wfc=wfc, bfc=bfc)


# ------------------------------ pure-JAX ref -------------------------------- #

def reference(feats, params, eps=1e-5):
    embeds = []
    for x, p in zip(feats, params["branches"]):
        h = x @ p["w1"] + p["b1"]
        h = (h - p["m1"]) / jnp.sqrt(p["v1"] + eps) * p["g1"] + p["be1"]
        h = jnp.maximum(h, 0.0)
        e = h @ p["w2"] + p["b2"]
        e = (e - p["m2"]) / jnp.sqrt(p["v2"] + eps) * p["g2"] + p["be2"]
        e = jnp.maximum(e, 0.0)
        embeds.append(e)
    prod = jnp.prod(jnp.stack(embeds, axis=0), axis=0)
    return prod @ params["wfc"] + params["bfc"]


# --------------------------------- main -------------------------------------- #

if __name__ == "__main__":
    key = jax.random.PRNGKey(0)
    # Small stand-ins for net_dim=[2048, 2048], embed_dim=1024, num_classes=414.
    net_dim = [64, 64]
    embed_dim = 128
    num_classes = 18          # exercises the pad-to-128-lanes classifier path
    batch = 24                # not a multiple of 16: exercises batch padding
                              # (tm=16 -> B padded to 32 -> 2-step grid)

    kp, kx0, kx1 = jax.random.split(key, 3)
    params = init_params(kp, net_dim, embed_dim, num_classes)
    feats = [jax.random.normal(kx0, (batch, net_dim[0]), jnp.float32),
             jax.random.normal(kx1, (batch, net_dim[1]), jnp.float32)]

    # Parameter prep (BN fold / bf16 cast / lane pad) done ONCE, outside the
    # per-call path.
    prepared = prepare_kernel_params(params)

    out = bilinear_two_layer(feats, prepared)
    out = jax.block_until_ready(out)

    ref = reference(feats, params)
    assert out.shape == (batch, num_classes)
    # bf16 matmul inputs (f32 accumulate) -> loose tolerance vs f32 reference.
    assert jnp.allclose(out, ref, atol=3e-2, rtol=3e-2), (
        f"mismatch vs JAX reference, max abs err {jnp.max(jnp.abs(out - ref))}")
    print("KERNEL_OK")
</pallas_src>

<mosaic_0001>
module attributes {stable_mosaic.version = 11 : i64} {
  func.func @kernel(%arg0: i32, %arg1: memref<16x64xf32, #tpu.memory_space<vmem>>, %arg2: memref<64x128xbf16, #tpu.memory_space<vmem>>, %arg3: memref<1x128xf32, #tpu.memory_space<vmem>>, %arg4: memref<128x128xbf16, #tpu.memory_space<vmem>>, %arg5: memref<1x128xf32, #tpu.memory_space<vmem>>, %arg6: memref<16x64xf32, #tpu.memory_space<vmem>>, %arg7: memref<64x128xbf16, #tpu.memory_space<vmem>>, %arg8: memref<1x128xf32, #tpu.memory_space<vmem>>, %arg9: memref<128x128xbf16, #tpu.memory_space<vmem>>, %arg10: memref<1x128xf32, #tpu.memory_space<vmem>>, %arg11: memref<128x128xbf16, #tpu.memory_space<vmem>>, %arg12: memref<1x128xf32, #tpu.memory_space<vmem>>, %arg13: memref<16x128xf32, #tpu.memory_space<vmem>>) attributes {dimension_semantics = [#tpu.dimension_semantics<parallel>], iteration_bounds = array<i64: 2>, scalar_prefetch = 0 : i64, scratch_operands = 0 : i64, tpu.core_type = #tpu.core_type<tc>, window_params = [{transform_indices = @transform_0, window_bounds = array<i64: 16, 64>}, {pipeline_mode = #tpu.pipeline_mode<synchronous>, transform_indices = @transform_1, window_bounds = array<i64: 64, 128>}, {pipeline_mode = #tpu.pipeline_mode<synchronous>, transform_indices = @transform_2, window_bounds = array<i64: 1, 128>}, {pipeline_mode = #tpu.pipeline_mode<synchronous>, transform_indices = @transform_3, window_bounds = array<i64: 128, 128>}, {pipeline_mode = #tpu.pipeline_mode<synchronous>, transform_indices = @transform_4, window_bounds = array<i64: 1, 128>}, {transform_indices = @transform_5, window_bounds = array<i64: 16, 64>}, {pipeline_mode = #tpu.pipeline_mode<synchronous>, transform_indices = @transform_6, window_bounds = array<i64: 64, 128>}, {pipeline_mode = #tpu.pipeline_mode<synchronous>, transform_indices = @transform_7, window_bounds = array<i64: 1, 128>}, {pipeline_mode = #tpu.pipeline_mode<synchronous>, transform_indices = @transform_8, window_bounds = array<i64: 128, 128>}, {pipeline_mode = #tpu.pipeline_mode<synchronous>, transform_indices = @transform_9, window_bounds = array<i64: 1, 128>}, {pipeline_mode = #tpu.pipeline_mode<synchronous>, transform_indices = @transform_10, window_bounds = array<i64: 128, 128>}, {pipeline_mode = #tpu.pipeline_mode<synchronous>, transform_indices = @transform_11, window_bounds = array<i64: 1, 128>}, {transform_indices = @transform_12, window_bounds = array<i64: 16, 128>}]} {
    %c0 = arith.constant 0 : index
    %c0_0 = arith.constant 0 : index
    %0 = vector.load %arg1[%c0, %c0_0] : memref<16x64xf32, #tpu.memory_space<vmem>>, vector<16x64xf32>
    %1 = arith.truncf %0 : vector<16x64xf32> to vector<16x64xbf16>
    %c0_1 = arith.constant 0 : index
    %c0_2 = arith.constant 0 : index
    %2 = vector.load %arg2[%c0_1, %c0_2] : memref<64x128xbf16, #tpu.memory_space<vmem>>, vector<64x128xbf16>
    %cst = arith.constant dense<0.000000e+00> : vector<16x128xf32>
    %3 = tpu.matmul %1, %2, %cst {dimension_numbers = #tpu.dot_dimension_numbers<[1], [0], [0], [1], [0, 0, 1, 1], [], []>} : vector<16x64xbf16>, vector<64x128xbf16>, vector<16x128xf32> -> vector<16x128xf32>
    %c0_3 = arith.constant 0 : index
    %c0_4 = arith.constant 0 : index
    %4 = vector.load %arg3[%c0_3, %c0_4] : memref<1x128xf32, #tpu.memory_space<vmem>>, vector<1x128xf32>
    %5 = vector.broadcast %4 : vector<1x128xf32> to vector<16x128xf32>
    %6 = arith.addf %3, %5 : vector<16x128xf32>
    %cst_5 = arith.constant 0.000000e+00 : f32
    %7 = vector.broadcast %cst_5 : f32 to vector<16x128xf32>
    %8 = arith.maximumf %6, %7 : vector<16x128xf32>
    %9 = arith.truncf %8 : vector<16x128xf32> to vector<16x128xbf16>
    %c0_6 = arith.constant 0 : index
    %c0_7 = arith.constant 0 : index
    %10 = vector.load %arg4[%c0_6, %c0_7] : memref<128x128xbf16, #tpu.memory_space<vmem>>, vector<128x128xbf16>
    %cst_8 = arith.constant dense<0.000000e+00> : vector<16x128xf32>
    %11 = tpu.matmul %9, %10, %cst_8 {dimension_numbers = #tpu.dot_dimension_numbers<[1], [0], [0], [1], [0, 0, 1, 1], [], []>} : vector<16x128xbf16>, vector<128x128xbf16>, vector<16x128xf32> -> vector<16x128xf32>
    %c0_9 = arith.constant 0 : index
    %c0_10 = arith.constant 0 : index
    %12 = vector.load %arg5[%c0_9, %c0_10] : memref<1x128xf32, #tpu.memory_space<vmem>>, vector<1x128xf32>
    %13 = vector.broadcast %12 : vector<1x128xf32> to vector<16x128xf32>
    %14 = arith.addf %11, %13 : vector<16x128xf32>
    %cst_11 = arith.constant 0.000000e+00 : f32
    %15 = vector.broadcast %cst_11 : f32 to vector<16x128xf32>
    %16 = arith.maximumf %14, %15 : vector<16x128xf32>
    %c0_12 = arith.constant 0 : index
    %c0_13 = arith.constant 0 : index
    %17 = vector.load %arg6[%c0_12, %c0_13] : memref<16x64xf32, #tpu.memory_space<vmem>>, vector<16x64xf32>
    %18 = arith.truncf %17 : vector<16x64xf32> to vector<16x64xbf16>
    %c0_14 = arith.constant 0 : index
    %c0_15 = arith.constant 0 : index
    %19 = vector.load %arg7[%c0_14, %c0_15] : memref<64x128xbf16, #tpu.memory_space<vmem>>, vector<64x128xbf16>
    %cst_16 = arith.constant dense<0.000000e+00> : vector<16x128xf32>
    %20 = tpu.matmul %18, %19, %cst_16 {dimension_numbers = #tpu.dot_dimension_numbers<[1], [0], [0], [1], [0, 0, 1, 1], [], []>} : vector<16x64xbf16>, vector<64x128xbf16>, vector<16x128xf32> -> vector<16x128xf32>
    %c0_17 = arith.constant 0 : index
    %c0_18 = arith.constant 0 : index
    %21 = vector.load %arg8[%c0_17, %c0_18] : memref<1x128xf32, #tpu.memory_space<vmem>>, vector<1x128xf32>
    %22 = vector.broadcast %21 : vector<1x128xf32> to vector<16x128xf32>
    %23 = arith.addf %20, %22 : vector<16x128xf32>
    %cst_19 = arith.constant 0.000000e+00 : f32
    %24 = vector.broadcast %cst_19 : f32 to vector<16x128xf32>
    %25 = arith.maximumf %23, %24 : vector<16x128xf32>
    %26 = arith.truncf %25 : vector<16x128xf32> to vector<16x128xbf16>
    %c0_20 = arith.constant 0 : index
    %c0_21 = arith.constant 0 : index
    %27 = vector.load %arg9[%c0_20, %c0_21] : memref<128x128xbf16, #tpu.memory_space<vmem>>, vector<128x128xbf16>
    %cst_22 = arith.constant dense<0.000000e+00> : vector<16x128xf32>
    %28 = tpu.matmul %26, %27, %cst_22 {dimension_numbers = #tpu.dot_dimension_numbers<[1], [0], [0], [1], [0, 0, 1, 1], [], []>} : vector<16x128xbf16>, vector<128x128xbf16>, vector<16x128xf32> -> vector<16x128xf32>
    %c0_23 = arith.constant 0 : index
    %c0_24 = arith.constant 0 : index
    %29 = vector.load %arg10[%c0_23, %c0_24] : memref<1x128xf32, #tpu.memory_space<vmem>>, vector<1x128xf32>
    %30 = vector.broadcast %29 : vector<1x128xf32> to vector<16x128xf32>
    %31 = arith.addf %28, %30 : vector<16x128xf32>
    %cst_25 = arith.constant 0.000000e+00 : f32
    %32 = vector.broadcast %cst_25 : f32 to vector<16x128xf32>
    %33 = arith.maximumf %31, %32 : vector<16x128xf32>
    %34 = arith.mulf %16, %33 : vector<16x128xf32>
    %35 = arith.truncf %34 : vector<16x128xf32> to vector<16x128xbf16>
    %c0_26 = arith.constant 0 : index
    %c0_27 = arith.constant 0 : index
    %36 = vector.load %arg11[%c0_26, %c0_27] : memref<128x128xbf16, #tpu.memory_space<vmem>>, vector<128x128xbf16>
    %cst_28 = arith.constant dense<0.000000e+00> : vector<16x128xf32>
    %37 = tpu.matmul %35, %36, %cst_28 {dimension_numbers = #tpu.dot_dimension_numbers<[1], [0], [0], [1], [0, 0, 1, 1], [], []>} : vector<16x128xbf16>, vector<128x128xbf16>, vector<16x128xf32> -> vector<16x128xf32>
    %c0_29 = arith.constant 0 : index
    %c0_30 = arith.constant 0 : index
    %38 = vector.load %arg12[%c0_29, %c0_30] : memref<1x128xf32, #tpu.memory_space<vmem>>, vector<1x128xf32>
    %39 = vector.broadcast %38 : vector<1x128xf32> to vector<16x128xf32>
    %40 = arith.addf %37, %39 : vector<16x128xf32>
    %c0_31 = arith.constant 0 : index
    %c0_32 = arith.constant 0 : index
    %41 = vector.load %arg13[%c0_31, %c0_32] : memref<16x128xf32, #tpu.memory_space<vmem>>, vector<16x128xf32>
    tpu.vector_store %arg13[%c0_31, %c0_32], %40 {strides = array<i32>} : memref<16x128xf32, #tpu.memory_space<vmem>>, vector<16x128xf32>,
    return
  }
  func.func @transform_0(%arg0: i32) -> (i32, i32) {
    %c0_i32 = arith.constant 0 : i32
    %c0_i32_0 = arith.constant 0 : i32
    return %arg0, %c0_i32 : i32, i32
  }
  func.func @transform_1(%arg0: i32) -> (i32, i32) {
    %c0_i32 = arith.constant 0 : i32
    %c0_i32_0 = arith.constant 0 : i32
    %c0_i32_1 = arith.constant 0 : i32
    return %c0_i32, %c0_i32_0 : i32, i32
  }
  func.func @transform_2(%arg0: i32) -> (i32, i32) {
    %c0_i32 = arith.constant 0 : i32
    %c0_i32_0 = arith.constant 0 : i32
    %c0_i32_1 = arith.constant 0 : i32
    return %c0_i32, %c0_i32_0 : i32, i32
  }
  func.func @transform_3(%arg0: i32) -> (i32, i32) {
    %c0_i32 = arith.constant 0 : i32
    %c0_i32_0 = arith.constant 0 : i32
    %c0_i32_1 = arith.constant 0 : i32
    return %c0_i32, %c0_i32_0 : i32, i32
  }
  func.func @transform_4(%arg0: i32) -> (i32, i32) {
    %c0_i32 = arith.constant 0 : i32
    %c0_i32_0 = arith.constant 0 : i32
    %c0_i32_1 = arith.constant 0 : i32
    return %c0_i32, %c0_i32_0 : i32, i32
  }
  func.func @transform_5(%arg0: i32) -> (i32, i32) {
    %c0_i32 = arith.constant 0 : i32
    %c0_i32_0 = arith.constant 0 : i32
    return %arg0, %c0_i32 : i32, i32
  }
  func.func @transform_6(%arg0: i32) -> (i32, i32) {
    %c0_i32 = arith.constant 0 : i32
    %c0_i32_0 = arith.constant 0 : i32
    %c0_i32_1 = arith.constant 0 : i32
    return %c0_i32, %c0_i32_0 : i32, i32
  }
  func.func @transform_7(%arg0: i32) -> (i32, i32) {
    %c0_i32 = arith.constant 0 : i32
    %c0_i32_0 = arith.constant 0 : i32
    %c0_i32_1 = arith.constant 0 : i32
    return %c0_i32, %c0_i32_0 : i32, i32
  }
  func.func @transform_8(%arg0: i32) -> (i32, i32) {
    %c0_i32 = arith.constant 0 : i32
    %c0_i32_0 = arith.constant 0 : i32
    %c0_i32_1 = arith.constant 0 : i32
    return %c0_i32, %c0_i32_0 : i32, i32
  }
  func.func @transform_9(%arg0: i32) -> (i32, i32) {
    %c0_i32 = arith.constant 0 : i32
    %c0_i32_0 = arith.constant 0 : i32
    %c0_i32_1 = arith.constant 0 : i32
    return %c0_i32, %c0_i32_0 : i32, i32
  }
  func.func @transform_10(%arg0: i32) -> (i32, i32) {
    %c0_i32 = arith.constant 0 : i32
    %c0_i32_0 = arith.constant 0 : i32
    %c0_i32_1 = arith.constant 0 : i32
    return %c0_i32, %c0_i32_0 : i32, i32
  }
  func.func @transform_11(%arg0: i32) -> (i32, i32) {
    %c0_i32 = arith.constant 0 : i32
    %c0_i32_0 = arith.constant 0 : i32
    %c0_i32_1 = arith.constant 0 : i32
    return %c0_i32, %c0_i32_0 : i32, i32
  }
  func.func @transform_12(%arg0: i32) -> (i32, i32) {
    %c0_i32 = arith.constant 0 : i32
    %c0_i32_0 = arith.constant 0 : i32
    return %arg0, %c0_i32 : i32, i32
  }
}

module attributes {stable_mosaic.version = 11 : i64} {
  func.func @kernel(%arg0: i32, %arg1: memref<16x64xf32, #tpu.memory_space<vmem>>, %arg2: memref<64x128xbf16, #tpu.memory_space<vmem>>, %arg3: memref<1x128xf32, #tpu.memory_space<vmem>>, %arg4: memref<128x128xbf16, #tpu.memory_space<vmem>>, %arg5: memref<1x128xf32, #tpu.memory_space<vmem>>, %arg6: memref<16x64xf32, #tpu.memory_space<vmem>>, %arg7: memref<64x128xbf16, #tpu.memory_space<vmem>>, %arg8: memref<1x128xf32, #tpu.memory_space<vmem>>, %arg9: memref<128x128xbf16, #tpu.memory_space<vmem>>, %arg10: memref<1x128xf32, #tpu.memory_space<vmem>>, %arg11: memref<128x128xbf16, #tpu.memory_space<vmem>>, %arg12: memref<1x128xf32, #tpu.memory_space<vmem>>, %arg13: memref<16x128xf32, #tpu.memory_space<vmem>>) attributes {dimension_semantics = [#tpu.dimension_semantics<parallel>], iteration_bounds = array<i64: 2>, scalar_prefetch = 0 : i64, scratch_operands = 0 : i64, tpu.core_type = #tpu.core_type<tc>, window_params = [{transform_indices = @transform_0, window_bounds = array<i64: 16, 64>}, {pipeline_mode = #tpu.pipeline_mode<synchronous>, transform_indices = @transform_1, window_bounds = array<i64: 64, 128>}, {pipeline_mode = #tpu.pipeline_mode<synchronous>, transform_indices = @transform_2, window_bounds = array<i64: 1, 128>}, {pipeline_mode = #tpu.pipeline_mode<synchronous>, transform_indices = @transform_3, window_bounds = array<i64: 128, 128>}, {pipeline_mode = #tpu.pipeline_mode<synchronous>, transform_indices = @transform_4, window_bounds = array<i64: 1, 128>}, {transform_indices = @transform_5, window_bounds = array<i64: 16, 64>}, {pipeline_mode = #tpu.pipeline_mode<synchronous>, transform_indices = @transform_6, window_bounds = array<i64: 64, 128>}, {pipeline_mode = #tpu.pipeline_mode<synchronous>, transform_indices = @transform_7, window_bounds = array<i64: 1, 128>}, {pipeline_mode = #tpu.pipeline_mode<synchronous>, transform_indices = @transform_8, window_bounds = array<i64: 128, 128>}, {pipeline_mode = #tpu.pipeline_mode<synchronous>, transform_indices = @transform_9, window_bounds = array<i64: 1, 128>}, {pipeline_mode = #tpu.pipeline_mode<synchronous>, transform_indices = @transform_10, window_bounds = array<i64: 128, 128>}, {pipeline_mode = #tpu.pipeline_mode<synchronous>, transform_indices = @transform_11, window_bounds = array<i64: 1, 128>}, {transform_indices = @transform_12, window_bounds = array<i64: 16, 128>}]} {
    %c0 = arith.constant 0 : index
    %c0_0 = arith.constant 0 : index
    %0 = vector.load %arg1[%c0, %c0_0] : memref<16x64xf32, #tpu.memory_space<vmem>>, vector<16x64xf32>
    %1 = arith.truncf %0 : vector<16x64xf32> to vector<16x64xbf16>
    %c0_1 = arith.constant 0 : index
    %c0_2 = arith.constant 0 : index
    %2 = vector.load %arg2[%c0_1, %c0_2] : memref<64x128xbf16, #tpu.memory_space<vmem>>, vector<64x128xbf16>
    %cst = arith.constant dense<0.000000e+00> : vector<16x128xf32>
    %3 = tpu.matmul %1, %2, %cst {dimension_numbers = #tpu.dot_dimension_numbers<[1], [0], [0], [1], [0, 0, 1, 1], [], []>} : vector<16x64xbf16>, vector<64x128xbf16>, vector<16x128xf32> -> vector<16x128xf32>
    %c0_3 = arith.constant 0 : index
    %c0_4 = arith.constant 0 : index
    %4 = vector.load %arg3[%c0_3, %c0_4] : memref<1x128xf32, #tpu.memory_space<vmem>>, vector<1x128xf32>
    %5 = vector.broadcast %4 : vector<1x128xf32> to vector<16x128xf32>
    %6 = arith.addf %3, %5 : vector<16x128xf32>
    %cst_5 = arith.constant 0.000000e+00 : f32
    %7 = vector.broadcast %cst_5 : f32 to vector<16x128xf32>
    %8 = arith.maximumf %6, %7 : vector<16x128xf32>
    %9 = arith.truncf %8 : vector<16x128xf32> to vector<16x128xbf16>
    %c0_6 = arith.constant 0 : index
    %c0_7 = arith.constant 0 : index
    %10 = vector.load %arg4[%c0_6, %c0_7] : memref<128x128xbf16, #tpu.memory_space<vmem>>, vector<128x128xbf16>
    %cst_8 = arith.constant dense<0.000000e+00> : vector<16x128xf32>
    %11 = tpu.matmul %9, %10, %cst_8 {dimension_numbers = #tpu.dot_dimension_numbers<[1], [0], [0], [1], [0, 0, 1, 1], [], []>} : vector<16x128xbf16>, vector<128x128xbf16>, vector<16x128xf32> -> vector<16x128xf32>
    %c0_9 = arith.constant 0 : index
    %c0_10 = arith.constant 0 : index
    %12 = vector.load %arg5[%c0_9, %c0_10] : memref<1x128xf32, #tpu.memory_space<vmem>>, vector<1x128xf32>
    %13 = vector.broadcast %12 : vector<1x128xf32> to vector<16x128xf32>
    %14 = arith.addf %11, %13 : vector<16x128xf32>
    %cst_11 = arith.constant 0.000000e+00 : f32
    %15 = vector.broadcast %cst_11 : f32 to vector<16x128xf32>
    %16 = arith.maximumf %14, %15 : vector<16x128xf32>
    %c0_12 = arith.constant 0 : index
    %c0_13 = arith.constant 0 : index
    %17 = vector.load %arg6[%c0_12, %c0_13] : memref<16x64xf32, #tpu.memory_space<vmem>>, vector<16x64xf32>
    %18 = arith.truncf %17 : vector<16x64xf32> to vector<16x64xbf16>
    %c0_14 = arith.constant 0 : index
    %c0_15 = arith.constant 0 : index
    %19 = vector.load %arg7[%c0_14, %c0_15] : memref<64x128xbf16, #tpu.memory_space<vmem>>, vector<64x128xbf16>
    %cst_16 = arith.constant dense<0.000000e+00> : vector<16x128xf32>
    %20 = tpu.matmul %18, %19, %cst_16 {dimension_numbers = #tpu.dot_dimension_numbers<[1], [0], [0], [1], [0, 0, 1, 1], [], []>} : vector<16x64xbf16>, vector<64x128xbf16>, vector<16x128xf32> -> vector<16x128xf32>
    %c0_17 = arith.constant 0 : index
    %c0_18 = arith.constant 0 : index
    %21 = vector.load %arg8[%c0_17, %c0_18] : memref<1x128xf32, #tpu.memory_space<vmem>>, vector<1x128xf32>
    %22 = vector.broadcast %21 : vector<1x128xf32> to vector<16x128xf32>
    %23 = arith.addf %20, %22 : vector<16x128xf32>
    %cst_19 = arith.constant 0.000000e+00 : f32
    %24 = vector.broadcast %cst_19 : f32 to vector<16x128xf32>
    %25 = arith.maximumf %23, %24 : vector<16x128xf32>
    %26 = arith.truncf %25 : vector<16x128xf32> to vector<16x128xbf16>
    %c0_20 = arith.constant 0 : index
    %c0_21 = arith.constant 0 : index
    %27 = vector.load %arg9[%c0_20, %c0_21] : memref<128x128xbf16, #tpu.memory_space<vmem>>, vector<128x128xbf16>
    %cst_22 = arith.constant dense<0.000000e+00> : vector<16x128xf32>
    %28 = tpu.matmul %26, %27, %cst_22 {dimension_numbers = #tpu.dot_dimension_numbers<[1], [0], [0], [1], [0, 0, 1, 1], [], []>} : vector<16x128xbf16>, vector<128x128xbf16>, vector<16x128xf32> -> vector<16x128xf32>
    %c0_23 = arith.constant 0 : index
    %c0_24 = arith.constant 0 : index
    %29 = vector.load %arg10[%c0_23, %c0_24] : memref<1x128xf32, #tpu.memory_space<vmem>>, vector<1x128xf32>
    %30 = vector.broadcast %29 : vector<1x128xf32> to vector<16x128xf32>
    %31 = arith.addf %28, %30 : vector<16x128xf32>
    %cst_25 = arith.constant 0.000000e+00 : f32
    %32 = vector.broadcast %cst_25 : f32 to vector<16x128xf32>
    %33 = arith.maximumf %31, %32 : vector<16x128xf32>
    %34 = arith.mulf %16, %33 : vector<16x128xf32>
    %35 = arith.truncf %34 : vector<16x128xf32> to vector<16x128xbf16>
    %c0_26 = arith.constant 0 : index
    %c0_27 = arith.constant 0 : index
    %36 = vector.load %arg11[%c0_26, %c0_27] : memref<128x128xbf16, #tpu.memory_space<vmem>>, vector<128x128xbf16>
    %cst_28 = arith.constant dense<0.000000e+00> : vector<16x128xf32>
    %37 = tpu.matmul %35, %36, %cst_28 {dimension_numbers = #tpu.dot_dimension_numbers<[1], [0], [0], [1], [0, 0, 1, 1], [], []>} : vector<16x128xbf16>, vector<128x128xbf16>, vector<16x128xf32> -> vector<16x128xf32>
    %c0_29 = arith.constant 0 : index
    %c0_30 = arith.constant 0 : index
    %38 = vector.load %arg12[%c0_29, %c0_30] : memref<1x128xf32, #tpu.memory_space<vmem>>, vector<1x128xf32>
    %39 = vector.broadcast %38 : vector<1x128xf32> to vector<16x128xf32>
    %40 = arith.addf %37, %39 : vector<16x128xf32>
    %c0_31 = arith.constant 0 : index
    %c0_32 = arith.constant 0 : index
    %41 = vector.load %arg13[%c0_31, %c0_32] : memref<16x128xf32, #tpu.memory_space<vmem>>, vector<16x128xf32>
    tpu.vector_store %arg13[%c0_31, %c0_32], %40 {strides = array<i32>} : memref<16x128xf32, #tpu.memory_space<vmem>>, vector<16x128xf32>,
    return
  }
  func.func @transform_0(%arg0: i32) -> (i32, i32) {
    %c0_i32 = arith.constant 0 : i32
    %c0_i32_0 = arith.constant 0 : i32
    return %arg0, %c0_i32 : i32, i32
  }
  func.func @transform_1(%arg0: i32) -> (i32, i32) {
    %c0_i32 = arith.constant 0 : i32
    %c0_i32_0 = arith.constant 0 : i32
    %c0_i32_1 = arith.constant 0 : i32
    return %c0_i32, %c0_i32_0 : i32, i32
  }
  func.func @transform_2(%arg0: i32) -> (i32, i32) {
    %c0_i32 = arith.constant 0 : i32
    %c0_i32_0 = arith.constant 0 : i32
    %c0_i32_1 = arith.constant 0 : i32
    return %c0_i32, %c0_i32_0 : i32, i32
  }
  func.func @transform_3(%arg0: i32) -> (i32, i32) {
    %c0_i32 = arith.constant 0 : i32
    %c0_i32_0 = arith.constant 0 : i32
    %c0_i32_1 = arith.constant 0 : i32
    return %c0_i32, %c0_i32_0 : i32, i32
  }
  func.func @transform_4(%arg0: i32) -> (i32, i32) {
    %c0_i32 = arith.constant 0 : i32
    %c0_i32_0 = arith.constant 0 : i32
    %c0_i32_1 = arith.constant 0 : i32
    return %c0_i32, %c0_i32_0 : i32, i32
  }
  func.func @transform_5(%arg0: i32) -> (i32, i32) {
    %c0_i32 = arith.constant 0 : i32
    %c0_i32_0 = arith.constant 0 : i32
    return %arg0, %c0_i32 : i32, i32
  }
  func.func @transform_6(%arg0: i32) -> (i32, i32) {
    %c0_i32 = arith.constant 0 : i32
    %c0_i32_0 = arith.constant 0 : i32
    %c0_i32_1 = arith.constant 0 : i32
    return %c0_i32, %c0_i32_0 : i32, i32
  }
  func.func @transform_7(%arg0: i32) -> (i32, i32) {
    %c0_i32 = arith.constant 0 : i32
    %c0_i32_0 = arith.constant 0 : i32
    %c0_i32_1 = arith.constant 0 : i32
    return %c0_i32, %c0_i32_0 : i32, i32
  }
  func.func @transform_8(%arg0: i32) -> (i32, i32) {
    %c0_i32 = arith.constant 0 : i32
    %c0_i32_0 = arith.constant 0 : i32
    %c0_i32_1 = arith.constant 0 : i32
    return %c0_i32, %c0_i32_0 : i32, i32
  }
  func.func @transform_9(%arg0: i32) -> (i32, i32) {
    %c0_i32 = arith.constant 0 : i32
    %c0_i32_0 = arith.constant 0 : i32
    %c0_i32_1 = arith.constant 0 : i32
    return %c0_i32, %c0_i32_0 : i32, i32
  }
  func.func @transform_10(%arg0: i32) -> (i32, i32) {
    %c0_i32 = arith.constant 0 : i32
    %c0_i32_0 = arith.constant 0 : i32
    %c0_i32_1 = arith.constant 0 : i32
    return %c0_i32, %c0_i32_0 : i32, i32
  }
  func.func @transform_11(%arg0: i32) -> (i32, i32) {
    %c0_i32 = arith.constant 0 : i32
    %c0_i32_0 = arith.constant 0 : i32
    %c0_i32_1 = arith.constant 0 : i32
    return %c0_i32, %c0_i32_0 : i32, i32
  }
  func.func @transform_12(%arg0: i32) -> (i32, i32) {
    %c0_i32 = arith.constant 0 : i32
    %c0_i32_0 = arith.constant 0 : i32
    return %arg0, %c0_i32 : i32, i32
  }
}

</mosaic_0001>

<bundles_post_ra>
// kernel: tpu_custom_call.1
= control target key start
LH: loop header
LB: loop body
LE: loop exit
PB: predicated region body
PF: predicated region fallthrough
CT: control target
= control target key end

     0   :  { %s1998_s0 = inlined_call_operand.hbm [shape: f32[32,64], index: 0, kind: input, shape index: {}]   ;;  %s1999_s1 = inlined_call_operand.hbm [shape: bf16[64,128], index: 1, kind: input, shape index: {}]   ;;  %s2000_s2 = inlined_call_operand.vmem [shape: f32[1,128], index: 2, kind: input, shape index: {}]   ;;  %s2001_s3 = inlined_call_operand.hbm [shape: bf16[128,128], index: 3, kind: input, shape index: {}]   ;;  %s2002_s4 = inlined_call_operand.vmem [shape: f32[1,128], index: 4, kind: input, shape index: {}]   ;;  %s2003_s5 = inlined_call_operand.hbm [shape: f32[32,64], index: 5, kind: input, shape index: {}]   ;;  %s2004_s6 = inlined_call_operand.hbm [shape: bf16[64,128], index: 6, kind: input, shape index: {}]   ;;  %s2005_s7 = inlined_call_operand.vmem [shape: f32[1,128], index: 7, kind: input, shape index: {}]   ;;  %s2006_s8 = inlined_call_operand.hbm [shape: bf16[128,128], index: 8, kind: input, shape index: {}]   ;;  %s2007_s9 = inlined_call_operand.vmem [shape: f32[1,128], index: 9, kind: input, shape index: {}]   ;;  %s2008_s10 = inlined_call_operand.hbm [shape: bf16[128,128], index: 10, kind: input, shape index: {}]   ;;  %s2009_s11 = inlined_call_operand.vmem [shape: f32[1,128], index: 11, kind: input, shape index: {}]   ;;  %s2010_s12 = inlined_call_operand.hbm [shape: f32[32,128], index: 12, kind: output, shape index: {}]  }
   0x1   :  { %2016 = sst [smem:[#allocation25_spill]] %s1998_s0 }
   0x2   :  { %2017 = sst [smem:[#allocation26_spill]] %s1999_s1 }
   0x3   :  { %2018 = sst [smem:[#allocation27_spill]] %s2001_s3 }
   0x4   :  { %2019 = sst [smem:[#allocation28_spill]] %s2004_s6 }
   0x5   :  { %2020 = sst [smem:[#allocation29_spill]] %s2006_s8 }
   0x6   :  { %2021 = sst [smem:[#allocation30_spill]] %s2008_s10 }
   0x7   :  { %2022 = sst [smem:[#allocation31_spill]] %s2010_s12 }
   0x8   :  { %17 = vsyncpa [#allocation3], 0 }
   0x9   :  { %19 = vsyncpa [#allocation3 + $0x1], 0 }
   0xa   :  { %20 = vsyncpa [#allocation6], 0 }
   0xb   :  { %21 = vsyncpa [#allocation9], 0 }
   0xc   :  { %23 = vsyncpa [#allocation9 + $0x1], 0 }
   0xd   :  { %24 = vsyncpa [#allocation12], 0 }
   0xe   :  { %25 = vsyncpa [#allocation4], 0 }
   0xf   :  { %27 = vsyncpa [#allocation4 + $0x1], 0  ;;  %s1771_s21 = smov 0   ;;  %s1773_s22 = smov 0  }
  0x10   :  { %s1775_s23 = smov 0   ;;  %s1777_s24 = smov 0  }
  0x11 LB: > { %2023 = sst [smem:[#allocation21_spill]] %s1689_s23  ;;  %s1795_s28 = sadd.s32 4294967295, %s1693_s24   ;;  %s1693_s24 = sphi %s1777_s24, %s2043_s24   ;;  %s1689_s23 = sphi %s1775_s23, %s2045_s23   ;;  %s1685_s22 = sphi %s1773_s22, %s2047_s22   ;;  %s1681_s21 = sphi %s1771_s21, %s2046_s21  }
  0x12   : > { %s2024_s1 = sld [smem:[#allocation26_spill]]  ;;  %p1096_p0 = scmp.ge.s32.totalorder %s1693_s24, 1 }
  0x13   : > { %p54_p1 = scmp.eq.s32.totalorder %s1795_s28, 0  ;;  %p326_p2 = scmp.lt.s32.totalorder %s1693_s24, 3 }
  0x14   : > { %s1695_s30 = smov [#allocation5]   ;;  %s2026_s6 = sld [smem:[#allocation28_spill]] }
  0x15   : > { %p1800_p3 = pnand %p1096_p0, %p326_p2  ;;  %s339_s13 = sshll.u32 %s1695_s30, 4  ;;  %s340_s13 = int_to_ptr.vmem [resolvable:$true] %s339_s13 }
  0x16   : > { %s2028_s8 = sld [smem:[#allocation29_spill]]  ;;  %s1696_s25 = smov [#allocation10]  }
  0x17   : > { %p1314_p4 = pneg %p1800_p3  ;;  %s373_s26 = sshll.u32 %s1696_s25, 4  ;;  %s374_s26 = int_to_ptr.vmem [resolvable:$true] %s373_s26 }
  0x18   : > { %s337_s27 = sshll.u32 %s2024_s1, 4  ;;  %s1697_s30 = smov 64   ;;  %s338_s27 = int_to_ptr.hbm [resolvable:$true] %s337_s27 }
  0x19   : > { %p1812_p6 = pnand %p1314_p4, %p54_p1  ;;  %s1698_s1 = smov 4  }
  0x1a   : > { %s371_s16 = sshll.u32 %s2026_s6, 4  ;;  %s2029_s3 = sld [smem:[#allocation27_spill]]  ;;  %s372_s16 = int_to_ptr.hbm [resolvable:$true] %s371_s16 }
  0x1b   : > { %1317 = dma.hbm_to_vmem [thread:$0]  (!%p1812_p6), %s338_s27, 512, %s340_s13, [#allocation6], %s1697_s30, %s1697_s30, %s1698_s1  }
  0x1c   : > { %s388_s20 = sshll.u32 %s2028_s8, 4  ;;  %s1699_s12 = smov [#allocation11]   ;;  %s389_s20 = int_to_ptr.hbm [resolvable:$true] %s388_s20 }
  0x1d   : > { %1323 = dma.hbm_to_vmem [thread:$0]  (!%p1812_p6), %s372_s16, 512, %s374_s26, [#allocation9], %s1697_s30, %s1697_s30, %s1698_s1  }
  0x1e   : > { %s390_s18 = sshll.u32 %s1699_s12, 4  ;;  %s1700_s27 = smov [#allocation7]   ;;  %s391_s18 = int_to_ptr.vmem [resolvable:$true] %s390_s18 }
  0x1f   : > { %1326 = dma.hbm_to_vmem [thread:$0]  (!%p1812_p6), %s389_s20, 1024, %s391_s18, [#allocation12], %s1697_s30, %s1697_s30, %s1698_s1  }
  0x20   : > { %s354_s6 = sshll.u32 %s2029_s3, 4  ;;  %s356_s13 = sshll.u32 %s1700_s27, 4  ;;  %s355_s6 = int_to_ptr.hbm [resolvable:$true] %s354_s6  ;;  %s357_s13 = int_to_ptr.vmem [resolvable:$true] %s356_s13 }
  0x21   : > { %s2030_s10 = sld [smem:[#allocation30_spill]]  ;;  %s1701_s12 = smov [#allocation13]  }
  0x22   : > { %1320 = dma.hbm_to_vmem [thread:$0]  (!%p1812_p6), %s355_s6, 1024, %s357_s13, [#allocation6], %s1697_s30, %s1697_s30, %s1698_s1  }
  0x23   : > { %s407_s26 = sshll.u32 %s1701_s12, 4  ;;  %s1095_s20 = sadd.s32 4294967294, %s1693_s24   ;;  %s408_s26 = int_to_ptr.vmem [resolvable:$true] %s407_s26 }
  0x24   : > { %s1837_s14 = sadd.s32 1, %s1693_s24   ;;  %s40_s15 = sadd.s32 1, %s1689_s23 }
  0x25   : > { %2031 = sst [smem:[#allocation22_spill]] %s1837_s14  ;;  %s37_s18 = ssub.s32 %s1693_s24, %s1837_s14 }
  0x26   : > { %p47_p7 = scmp.ne.s32.totalorder %s1689_s23, %s1685_s22  ;;  %p38_p8 = scmp.eq.s32.totalorder %s37_s18, 0 }
  0x27   : > { %s405_s25 = sshll.u32 %s2030_s10, 4  ;;  %p48_p9 = scmp.eq.s32.totalorder %s1693_s24, 0  ;;  %s406_s25 = int_to_ptr.hbm [resolvable:$true] %s405_s25 }
  0x28   : > { %1329 = dma.hbm_to_vmem [thread:$0]  (!%p1812_p6), %s406_s25, 1024, %s408_s26, [#allocation12], %s1697_s30, %s1697_s30, %s1698_s1  }
  0x29   : > { %p53_p10 = scmp.ne.s32.totalorder %s1685_s22, %s1681_s21  ;;  %p313_p11 = scmp.eq.s32.totalorder %s1795_s28, 1 }
  0x2a   : > { %s1849_s6 = scalar_select %p38_p8, %s1689_s23, %s40_s15  }
  0x2b   : > { %p1851_p12 = por %p48_p9, %p47_p7  ;;  %p1857_p13 = por %p54_p1, %p53_p10 }
  0x2c   : > { %2032 = sst [smem:[#allocation23_spill]] %s1849_s6  ;;  %p1861_p0 = por %p313_p11, %p47_p7 }
  0x2d   : > { %p319_p2 = scmp.eq.s32.totalorder %s1095_s20, 1  ;;  %p1346_p4 = scmp.lt.s32.totalorder %s1693_s24, 2 }
  0x2e   : > { %s424_s30 = sand.u32 1, %s1689_s23   ;;  %s1253_s19 = sshll.u32 %s1693_s24, 4 }
  0x2f   : > { %p1867_p6 = por %p319_p2, %p53_p10  ;;  %s1871_s16 = sshll.u32 %s424_s30, 4 }
  0x30   : > { %s2038_s0 = sld [smem:[#allocation25_spill]]  ;;  %s428_s18 = scalar_lea.vmem [#allocation2], %s1871_s16 }
  0x31   : > { %s2036_s13 = scalar_select %p1867_p6, 1, 0 }
  0x32   : > { %s436_s3 = sshll.u32 %s428_s18, 4  ;;  %p1880_p7 = pnand %p1346_p4, %p1851_p12  ;;  %s437_s3 = int_to_ptr.vmem [resolvable:$true] %s436_s3 }
  0x33   : > { %2037 = sst [smem:[#allocation24_spill]] %s2036_s13  ;;  %s455_s6 = scalar_lea.hbm %s2003_s5, %s1253_s19 }
  0x34   : > { %s425_s23 = scalar_lea.sflag [#allocation3], %s424_s30  ;;  %p1555_p9 = pneg %p1880_p7 }
  0x36   : > { %s433_s26 = scalar_lea.hbm %s2038_s0, %s1253_s19 }
  0x37   : > { %s434_s15 = sshll.u32 %s433_s26, 4  ;;  %s1558_s26 = scalar_lea.hbm %s2038_s0, 32  ;;  %s435_s15 = int_to_ptr.hbm [resolvable:$true] %s434_s15 }
  0x38   : > { %s1551_s14 = sshra.s32 %s435_s15, 4  ;;  %s1552_s14 = int_to_ptr.hbm [resolvable:$true] %s1551_s14 }
  0x39   : > { %s1553_s25 = scalar_lea.hbm %s1552_s14, 16  ;;  %p1559_p12 = scmp.lt.s32.totalorder %s1552_s14, %s2038_s0 }
  0x3a   : > { %p1554_p8 = scmp.ne.s32.totalorder %s1552_s14, %s1553_s25  ;;  %p1560_p2 = scmp.lt.s32.totalorder %s1558_s26, %s1553_s25 }
  0x3c   : > { %p1556_p10 = pnand %p1555_p9, %p1554_p8  ;;  %p1561_p4 = por %p1560_p2, %p1559_p12 }
  0x3e   : > { %p1557_p11 = pneg %p1556_p10 }
  0x40   : > { %p1562_p5 = pnand %p1561_p4, %p1557_p11 }
  0x42   : > { %1565 = shalt.err (!%p1562_p5)
}
  0x43   : > { %s1702_s10 = smov 128   ;;  %s1703_s30 = smov 8  }
  0x44   : > { %1333 = dma.hbm_to_vmem [thread:$0]  (!%p1880_p7), %s435_s15, 256, %s437_s3, %s425_s23, %s1702_s10, %s1702_s10, %s1703_s30  }
  0x45   : > { %s456_s19 = sshll.u32 %s455_s6, 4  ;;  %s450_s13 = scalar_lea.vmem [#allocation8], %s1871_s16  ;;  %s457_s19 = int_to_ptr.hbm [resolvable:$true] %s456_s19 }
  0x46   : > { %s458_s27 = sshll.u32 %s450_s13, 4  ;;  %s446_s12 = sand.u32 1, %s1693_s24   ;;  %s459_s27 = int_to_ptr.vmem [resolvable:$true] %s458_s27 }
  0x47   : > { %s447_s18 = scalar_lea.sflag [#allocation9], %s446_s12  ;;  %s1581_s14 = sshra.s32 %s457_s19, 4  ;;  %s1582_s14 = int_to_ptr.hbm [resolvable:$true] %s1581_s14 }
  0x48   : > { %s1583_s25 = scalar_lea.hbm %s1582_s14, 16  ;;  %s1588_s0 = scalar_lea.hbm %s2003_s5, 32 }
  0x49   : > { %p1584_p8 = scmp.ne.s32.totalorder %s1582_s14, %s1583_s25  ;;  %p1589_p11 = scmp.lt.s32.totalorder %s1582_s14, %s2003_s5 }
  0x4a   : > { %p1590_p12 = scmp.lt.s32.totalorder %s1588_s0, %s1583_s25 }
  0x4b   : > { %p1586_p5 = pnand %p1584_p8, %p1555_p9 }
  0x4c   : > { %p1591_p2 = por %p1590_p12, %p1589_p11 }
  0x4d   : > { %p1587_p10 = pneg %p1586_p5 }
  0x4f   : > { %p1592_p4 = pnand %p1591_p2, %p1587_p10 }
  0x51   : > { %1595 = shalt.err (!%p1592_p4)
}
  0x52   : > { %1336 = dma.hbm_to_vmem [thread:$0]  (!%p1880_p7), %s457_s19, 256, %s459_s27, %s447_s18, %s1702_s10, %s1702_s10, %s1703_s30  }
  0x53   : > { %470 = sbr.rel (%p1800_p3) target bundleno = 564 (0x234), region = 68  ;;  %s1916_s6 = sand.u32 (!%p1800_p3), 1, %s1685_s22  }
  0x54   : > { %s1919_s13 = sshll.u32 (!%p1800_p3), %s1916_s6, 4  ;;  %s473_s16 = scalar_lea.sflag (!%p1800_p3), [#allocation3], %s1916_s6 }
  0x55   : > { %s476_s0 = scalar_lea.vmem (!%p1800_p3), [#allocation2], %s1919_s13 }
  0x58   : > { %1656 = dma.done.wait (%p1857_p13), %s473_s16, 256  }
  0x59   : > { %1658 = vsyncadd (%p1857_p13), %s473_s16, 4294967040 }
  0x5a   : > { %1660 = dma.done.wait (%p54_p1), [#allocation6], 1536  }
  0x5b   : > { %1662 = vsyncadd (%p54_p1), [#allocation6], 4294965760  ;;  %s492_s29 = sand.u32 1, %s1795_s28   ;;  %s496_s20 = scalar_lea.vmem [#allocation8], %s1919_s13 }
  0x5c   : > { %s493_s15 = scalar_lea.sflag [#allocation9], %s492_s29 }
  0x5d   : > { %1664 = dma.done.wait (%p1857_p13), %s493_s15, 256  }
  0x5e   : > { %1666 = vsyncadd (%p1857_p13), %s493_s15, 4294967040 }
  0x5f   : > { %1668 = dma.done.wait (%p54_p1), [#allocation9], 512  }
  0x60   : > { %1670 = vsyncadd (%p54_p1), [#allocation9], 4294966784 }
  0x61   : > { %1672 = dma.done.wait (%p54_p1), [#allocation12], 2048  }
  0x62   : > { %1674 = vsyncadd (%p54_p1), [#allocation12], 4294965248  ;;  %v1258_v0 = vld [vmem:[#allocation5 + $0x18] sm:$0xff]  ;;  %v1257_v1 = vld [vmem:[#allocation5 + $0x10] sm:$0xff]  ;;  %vm601_vm0 = vcmask 523264   ;;  %s1287_s8 = sshll.u32 %s1795_s28, 4 }
  0x63   : > { %609 = vmatpush.bf16.msra.mxu2 %v1258_v0  ;;  %v1266_v2 = vld [vmem:[#allocation7 + $0x38] sm:$0xff]  ;;  %v1256_v3 = vld [vmem:[#allocation5 + $0x8] sm:$0xff]  ;;  %v1265_v4 = vld [vmem:[#allocation7 + $0x30] sm:$0xff]  ;;  %s2040_s16 = sld [smem:[#allocation31_spill]]  ;;  %s557_s29 = scalar_lea.vmem [#allocation14], %s1919_s13 }
  0x64   : > { %690 = vmatpush.bf16.msra.mxu1 %v1266_v2  ;;  %v1255_v5 = vld [vmem:[#allocation5] sm:$0xff]  ;;  %v563_v7 = vld [vmem:[%s476_s0 + $0x8] sm:$0xff]  ;;  %v1269_v12 = vld [vmem:[#allocation10 + $0x10] sm:$0xff]  ;;  %s949_s15 = sshll.u32 %s557_s29, 4  ;;  %s937_s1 = scalar_lea.sflag [#allocation4], %s1916_s6  ;;  %s950_s15 = int_to_ptr.vmem [resolvable:$true] %s949_s15 }
  0x65   : > { %v562_v6 = vld [vmem:[%s476_s0] sm:$0xff]  ;;  %v1264_v8 = vld [vmem:[#allocation7 + $0x28] sm:$0xff]  ;;  %v1270_v9 = vld [vmem:[#allocation10 + $0x18] sm:$0xff] }
  0x66   : > { %v564_v10 = vpack.c.bf16 %v563_v7, %v562_v6  ;;  %v1263_v11 = vld [vmem:[#allocation7 + $0x20] sm:$0xff]  ;;  %v1268_v13 = vld [vmem:[#allocation10 + $0x8] sm:$0xff]  ;;  %v1262_v18 = vld [vmem:[#allocation7 + $0x18] sm:$0xff] }
  0x67   : > { %610 = vmatpush.bf16.msra.mxu2 %v1257_v1  ;;  %v1267_v14 = vld [vmem:[#allocation10] sm:$0xff]  ;;  %v707_v16 = vld [vmem:[%s496_s20 + $0x8] sm:$0xff]  ;;  %v1261_v20 = vld [vmem:[#allocation7 + $0x10] sm:$0xff] }
  0x68   : > { %691 = vmatpush.bf16.msra.mxu1 %v1265_v4  ;;  %v706_v15 = vld [vmem:[%s496_s20] sm:$0xff]  ;;  %v1278_v19 = vld [vmem:[#allocation11 + $0x38] sm:$0xff]  ;;  %v1260_v22 = vld [vmem:[#allocation7 + $0x8] sm:$0xff] }
  0x69   : > { %v708_v17 = vpack.c.bf16 %v707_v16, %v706_v15  ;;  %833 = vmatpush.bf16.msra.mxu3 %v1278_v19  ;;  %v1277_v21 = vld [vmem:[#allocation11 + $0x30] sm:$0xff]  ;;  %v1276_v23 = vld [vmem:[#allocation11 + $0x28] sm:$0xff]  ;;  %v1259_v24 = vld [vmem:[#allocation7] sm:$0xff]  ;;  %s948_s0 = scalar_lea.hbm %s2040_s16, %s1287_s8  ;;  %s1631_s13 = scalar_lea.hbm %s2040_s16, 32 }
  0x6a   : > { %v1275_v25 = vld [vmem:[#allocation11 + $0x20] sm:$0xff]  ;;  %v1274_v26 = vld [vmem:[#allocation11 + $0x18] sm:$0xff]  ;;  %v1273_v27 = vld [vmem:[#allocation11 + $0x10] sm:$0xff]  ;;  %s951_s20 = sshll.u32 %s948_s0, 4  ;;  %s952_s20 = int_to_ptr.hbm [resolvable:$true] %s951_s20 }
  0x6b   : > { %611 = vmatpush.bf16.msra.mxu2 %v1256_v3  ;;  %v1272_v28 = vld [vmem:[#allocation11 + $0x8] sm:$0xff]  ;;  %v1271_v29 = vld [vmem:[#allocation11] sm:$0xff]  ;;  %v1286_v46 = vld [vmem:[#allocation13 + $0x38] sm:$0xff]  ;;  %s1625_s10 = sshra.s32 %s952_s20, 4  ;;  %s1626_s10 = int_to_ptr.hbm [resolvable:$true] %s1625_s10 }
  0x6c   : > { %692 = vmatpush.bf16.msra.mxu1 %v1264_v8  ;;  %v1396_v31 = vld [vmem:[%s2000_s2] ss:$0 sm:$0xff]  ;;  %920 = vmatpush.bf16.msra.mxu0 %v1286_v46  ;;  %v1285_v47 = vld [vmem:[#allocation13 + $0x30] sm:$0xff]  ;;  %v1284_v48 = vld [vmem:[#allocation13 + $0x28] sm:$0xff]  ;;  %s1627_s28 = scalar_lea.hbm %s1626_s10, 16  ;;  %p1632_p7 = scmp.lt.s32.totalorder %s1626_s10, %s2040_s16 }
  0x6d   : > { %834 = vmatpush.bf16.msra.mxu3 %v1277_v21  ;;  %v1397_v39 = vld [vmem:[%s2005_s7] ss:$0 sm:$0xff]  ;;  %v1282_v50 = vld [vmem:[#allocation13 + $0x18] sm:$0xff]  ;;  %v1281_v51 = vld [vmem:[#allocation13 + $0x10] sm:$0xff]  ;;  %p1628_p1 = scmp.ne.s32.totalorder %s1626_s10, %s1627_s28  ;;  %p1633_p9 = scmp.lt.s32.totalorder %s1631_s13, %s1627_s28 }
  0x6e   : > { %v1283_v49 = vld [vmem:[#allocation13 + $0x20] sm:$0xff]  ;;  %v1280_v52 = vld [vmem:[#allocation13 + $0x8] sm:$0xff] }
  0x6f   : > { %612 = vmatpush.bf16.msra.mxu2 %v1255_v5  ;;  %v1279_v53 = vld [vmem:[#allocation13] sm:$0xff]  ;;  %p1629_p3 = pnand %p1628_p1, %p1861_p0  ;;  %p1634_p8 = por %p1633_p9, %p1632_p7 }
  0x70   : > { %693 = vmatpush.bf16.msra.mxu1 %v1263_v11  ;;  %921 = vmatpush.bf16.msra.mxu0 %v1285_v47  ;;  %v1399_v56 = vld [vmem:[%s2007_s9] ss:$0 sm:$0xff] }
  0x71   : > { %835 = vmatpush.bf16.msra.mxu3 %v1276_v23  ;;  %v1398_v57 = vld [vmem:[%s2002_s4] ss:$0 sm:$0xff]  ;;  %p1630_p13 = pneg %p1629_p3 }
  0x72   : > { %1134 = vmatmul.msk.bf16.vlgmr.msra.gmra.mxu2 %vm601_vm0, %v564_v10  ;;  %v1400_v7 = vld [vmem:[%s2009_s11] ss:$0 sm:$0xff] }
  0x73   : > { %752 = vmatpush.bf16.msrb.mxu2 %v1270_v9  ;;  %p1635_p5 = pnand %p1634_p8, %p1630_p13 }
  0x74   : > { %694 = vmatpush.bf16.msra.mxu1 %v1262_v18  ;;  %922 = vmatpush.bf16.msra.mxu0 %v1284_v48 }
  0x75   : > { %836 = vmatpush.bf16.msra.mxu3 %v1275_v25 }
  0x77   : > { %753 = vmatpush.bf16.msrb.mxu2 %v1269_v12 }
  0x78   : > { %695 = vmatpush.bf16.msra.mxu1 %v1261_v20  ;;  %923 = vmatpush.bf16.msra.mxu0 %v1283_v49 }
  0x79   : > { %837 = vmatpush.bf16.msra.mxu3 %v1274_v26 }
  0x7b   : > { %754 = vmatpush.bf16.msrb.mxu2 %v1268_v13 }
  0x7c   : > { %696 = vmatpush.bf16.msra.mxu1 %v1260_v22  ;;  %924 = vmatpush.bf16.msra.mxu0 %v1282_v50 }
  0x7d   : > { %838 = vmatpush.bf16.msra.mxu3 %v1273_v27 }
  0x7f   : > { %755 = vmatpush.bf16.msrb.mxu2 %v1267_v14 }
  0x80   : > { %697 = vmatpush.bf16.msra.mxu1 %v1259_v24  ;;  %925 = vmatpush.bf16.msra.mxu0 %v1281_v51 }
  0x81   : > { %839 = vmatpush.bf16.msra.mxu3 %v1272_v28 }
  0x82   : > { %1183 = vmatmul.msk.bf16.vlgmr.msrb.gmra.mxu2 %vm601_vm0, %v708_v17 }
  0x84   : > { %926 = vmatpush.bf16.msra.mxu0 %v1280_v52 }
  0x85   : > { %840 = vmatpush.bf16.msra.mxu3 %v1271_v29 }
  0x88   : > { %927 = vmatpush.bf16.msra.mxu0 %v1279_v53 }
  0xf5   : > { %v614_v30 = vpop.f32.mrf.mxu2 }
  0xf6   : > { %v615_v32 = vadd.f32 %v1396_v31, %v614_v30 }
  0xf8   : > { %v619_v35 = vmax.f32 %v615_v32, 0.0 }
  0xfd   : > { %v616_v33 = vpop.f32.mrf.mxu2 }
  0xfe   : > { %v617_v34 = vadd.f32 %v1396_v31, %v616_v33 }
 0x100   : > { %v620_v36 = vmax.f32 %v617_v34, 0.0 }
 0x102   : > { %v621_v37 = vpack.c.bf16 %v620_v36, %v619_v35 }
 0x104   : > { %698 = vmatmul.bf16.vlgmr.msra.gmra.mxu1 %v621_v37 }
 0x105   : > { %v757_v38 = vpop.f32.mrf.mxu2 }
 0x106   : > { %v758_v40 = vadd.f32 %v1397_v39, %v757_v38 }
 0x108   : > { %v762_v43 = vmax.f32 %v758_v40, 0.0 }
 0x10d   : > { %v759_v41 = vpop.f32.mrf.mxu2 }
 0x10e   : > { %v760_v42 = vadd.f32 %v1397_v39, %v759_v41 }
 0x110   : > { %v763_v44 = vmax.f32 %v760_v42, 0.0 }
 0x112   : > { %v764_v45 = vpack.c.bf16 %v763_v44, %v762_v43 }
 0x114   : > { %841 = vmatmul.bf16.vlgmr.msra.gmra.mxu3 %v764_v45 }
 0x181   : > { %v699_v54 = vpop.f32.mrf.mxu1 }
 0x182   : > { %v700_v60 = vadd.f32 %v1398_v57, %v699_v54 }
 0x184   : > { %v704_v1 = vmax.f32 %v700_v60, 0.0 }
 0x189   : > { %v701_v58 = vpop.f32.mrf.mxu1 }
 0x18a   : > { %v702_v61 = vadd.f32 %v1398_v57, %v701_v58 }
 0x18c   : > { %v705_v2 = vmax.f32 %v702_v61, 0.0 }
 0x197   : > { %v842_v55 = vpop.f32.mrf.mxu3 }
 0x198   : > { %v843_v59 = vadd.f32 %v1399_v56, %v842_v55 }
 0x19a   : > { %v847_v63 = vmax.f32 %v843_v59, 0.0 }
 0x19c   : > { %v849_v4 = vmul.f32 %v847_v63, %v704_v1 }
 0x19f   : > { %v844_v62 = vpop.f32.mrf.mxu3 }
 0x1a0   : > { %v845_v0 = vadd.f32 %v1399_v56, %v844_v62 }
 0x1a2   : > { %v848_v3 = vmax.f32 %v845_v0, 0.0 }
 0x1a4   : > { %v850_v5 = vmul.f32 %v848_v3, %v705_v2 }
 0x1a6   : > { %v851_v6 = vpack.c.bf16 %v850_v5, %v849_v4 }
 0x1a8   : > { %928 = vmatmul.bf16.vlgmr.msra.gmra.mxu0 %v851_v6 }
 0x225   : > { %v929_v8 = vpop.f32.mrf.mxu0 }
 0x226   : > { %v930_v9 = vadd.f32 %v1400_v7, %v929_v8 }
 0x228   : > { %934 = vst [vmem:[%s557_s29] sm:$0xff] %v930_v9 }
 0x22d   : > { %v931_v10 = vpop.f32.mrf.mxu0 }
 0x22e   : > { %v932_v11 = vadd.f32 %v1400_v7, %v931_v10 }
 0x230   : > { %935 = vst [vmem:[%s557_s29 + $0x8] sm:$0xff] %v932_v11 }
 0x231   : > { %1638 = shalt.err (!%p1635_p5)
}
 0x232   : > { %s1704_s6 = smov 128   ;;  %s1705_s18 = smov 8  }
 0x233   : > { %1312 = dma.vmem_to_hbm [thread:$0]  (%p1861_p0), %s950_s15, 256, %s952_s20, %s937_s1, %s1704_s6, %s1704_s6, %s1705_s18  }
 0x234 PF: > { %s966_s25 = sand.u32 1, %s1681_s21   ;;  %p2042_p10 = scmp.ge.s32.totalorder %s1693_s24, 2 }
 0x235   : > { %s967_s26 = scalar_lea.sflag [#allocation4], %s966_s25 }
 0x236   : > { %p1338_p11 = pnand %p2042_p10, %p1867_p6 }
 0x238   : > { %p1339_p12 = pneg %p1338_p11 }
 0x23a   : > { %1676 = dma.done.wait (%p1339_p12), %s967_s26, 256  }
 0x23b   : > { %1678 = vsyncadd (%p1339_p12), %s967_s26, 4294967040  ;;  %s2043_s24 = sld [smem:[#allocation22_spill]]  ;;  %s2046_s21 = smov %s1685_s22 }
 0x23c   : > { %s2044_s8 = sld [smem:[#allocation21_spill]] }
 0x23d   : > { %s2045_s23 = sld [smem:[#allocation23_spill]] }
 0x241   : > { %p30_p2 = scmp.ge.s32.totalorder %s2043_s24, 4  }
 0x242   : > { %s2047_s22 = smov %s2044_s8 }
 0x243   :  { %32 = sbr.rel (!%p30_p2) target bundleno = 17 (0x11), region = 146 }
 0x248   :  { %973 = vsyncpa [#allocation3], 1 }
 0x249   :  { %975 = vsyncpa [#allocation3 + $0x1], 1 }
 0x24a   :  { %976 = vsyncpa [#allocation6], 1 }
 0x24b   :  { %977 = vsyncpa [#allocation9], 1 }
 0x24c   :  { %979 = vsyncpa [#allocation9 + $0x1], 1 }
 0x24d   :  { %980 = vsyncpa [#allocation12], 1 }
 0x24e   :  { %981 = vsyncpa [#allocation4], 1 }
 0x24f   :  { %983 = vsyncpa [#allocation4 + $0x1], 1 }

// kernel: tpu_custom_call.1
= control target key start
LH: loop header
LB: loop body
LE: loop exit
PB: predicated region body
PF: predicated region fallthrough
CT: control target
= control target key end

     0   :  { %s1998_s0 = inlined_call_operand.hbm [shape: f32[32,64], index: 0, kind: input, shape index: {}]   ;;  %s1999_s1 = inlined_call_operand.hbm [shape: bf16[64,128], index: 1, kind: input, shape index: {}]   ;;  %s2000_s2 = inlined_call_operand.vmem [shape: f32[1,128], index: 2, kind: input, shape index: {}]   ;;  %s2001_s3 = inlined_call_operand.hbm [shape: bf16[128,128], index: 3, kind: input, shape index: {}]   ;;  %s2002_s4 = inlined_call_operand.vmem [shape: f32[1,128], index: 4, kind: input, shape index: {}]   ;;  %s2003_s5 = inlined_call_operand.hbm [shape: f32[32,64], index: 5, kind: input, shape index: {}]   ;;  %s2004_s6 = inlined_call_operand.hbm [shape: bf16[64,128], index: 6, kind: input, shape index: {}]   ;;  %s2005_s7 = inlined_call_operand.vmem [shape: f32[1,128], index: 7, kind: input, shape index: {}]   ;;  %s2006_s8 = inlined_call_operand.hbm [shape: bf16[128,128], index: 8, kind: input, shape index: {}]   ;;  %s2007_s9 = inlined_call_operand.vmem [shape: f32[1,128], index: 9, kind: input, shape index: {}]   ;;  %s2008_s10 = inlined_call_operand.hbm [shape: bf16[128,128], index: 10, kind: input, shape index: {}]   ;;  %s2009_s11 = inlined_call_operand.vmem [shape: f32[1,128], index: 11, kind: input, shape index: {}]   ;;  %s2010_s12 = inlined_call_operand.hbm [shape: f32[32,128], index: 12, kind: output, shape index: {}]  }
   0x1   :  { %2016 = sst [smem:[#allocation25_spill]] %s1998_s0 }
   0x2   :  { %2017 = sst [smem:[#allocation26_spill]] %s1999_s1 }
   0x3   :  { %2018 = sst [smem:[#allocation27_spill]] %s2001_s3 }
   0x4   :  { %2019 = sst [smem:[#allocation28_spill]] %s2004_s6 }
   0x5   :  { %2020 = sst [smem:[#allocation29_spill]] %s2006_s8 }
   0x6   :  { %2021 = sst [smem:[#allocation30_spill]] %s2008_s10 }
   0x7   :  { %2022 = sst [smem:[#allocation31_spill]] %s2010_s12 }
   0x8   :  { %17 = vsyncpa [#allocation3], 0 }
   0x9   :  { %19 = vsyncpa [#allocation3 + $0x1], 0 }
   0xa   :  { %20 = vsyncpa [#allocation6], 0 }
   0xb   :  { %21 = vsyncpa [#allocation9], 0 }
   0xc   :  { %23 = vsyncpa [#allocation9 + $0x1], 0 }
   0xd   :  { %24 = vsyncpa [#allocation12], 0 }
   0xe   :  { %25 = vsyncpa [#allocation4], 0 }
   0xf   :  { %27 = vsyncpa [#allocation4 + $0x1], 0  ;;  %s1771_s21 = smov 0   ;;  %s1773_s22 = smov 0  }
  0x10   :  { %s1775_s23 = smov 0   ;;  %s1777_s24 = smov 0  }
  0x11 LB: > { %2023 = sst [smem:[#allocation21_spill]] %s1689_s23  ;;  %s1795_s28 = sadd.s32 4294967295, %s1693_s24   ;;  %s1693_s24 = sphi %s1777_s24, %s2043_s24   ;;  %s1689_s23 = sphi %s1775_s23, %s2045_s23   ;;  %s1685_s22 = sphi %s1773_s22, %s2047_s22   ;;  %s1681_s21 = sphi %s1771_s21, %s2046_s21  }
  0x12   : > { %s2024_s1 = sld [smem:[#allocation26_spill]]  ;;  %p1096_p0 = scmp.ge.s32.totalorder %s1693_s24, 1 }
  0x13   : > { %p54_p1 = scmp.eq.s32.totalorder %s1795_s28, 0  ;;  %p326_p2 = scmp.lt.s32.totalorder %s1693_s24, 3 }
  0x14   : > { %s1695_s30 = smov [#allocation5]   ;;  %s2026_s6 = sld [smem:[#allocation28_spill]] }
  0x15   : > { %p1800_p3 = pnand %p1096_p0, %p326_p2  ;;  %s339_s13 = sshll.u32 %s1695_s30, 4  ;;  %s340_s13 = int_to_ptr.vmem [resolvable:$true] %s339_s13 }
  0x16   : > { %s2028_s8 = sld [smem:[#allocation29_spill]]  ;;  %s1696_s25 = smov [#allocation10]  }
  0x17   : > { %p1314_p4 = pneg %p1800_p3  ;;  %s373_s26 = sshll.u32 %s1696_s25, 4  ;;  %s374_s26 = int_to_ptr.vmem [resolvable:$true] %s373_s26 }
  0x18   : > { %s337_s27 = sshll.u32 %s2024_s1, 4  ;;  %s1697_s30 = smov 64   ;;  %s338_s27 = int_to_ptr.hbm [resolvable:$true] %s337_s27 }
  0x19   : > { %p1812_p6 = pnand %p1314_p4, %p54_p1  ;;  %s1698_s1 = smov 4  }
  0x1a   : > { %s371_s16 = sshll.u32 %s2026_s6, 4  ;;  %s2029_s3 = sld [smem:[#allocation27_spill]]  ;;  %s372_s16 = int_to_ptr.hbm [resolvable:$true] %s371_s16 }
  0x1b   : > { %1317 = dma.hbm_to_vmem [thread:$0]  (!%p1812_p6), %s338_s27, 512, %s340_s13, [#allocation6], %s1697_s30, %s1697_s30, %s1698_s1  }
  0x1c   : > { %s388_s20 = sshll.u32 %s2028_s8, 4  ;;  %s1699_s12 = smov [#allocation11]   ;;  %s389_s20 = int_to_ptr.hbm [resolvable:$true] %s388_s20 }
  0x1d   : > { %1323 = dma.hbm_to_vmem [thread:$0]  (!%p1812_p6), %s372_s16, 512, %s374_s26, [#allocation9], %s1697_s30, %s1697_s30, %s1698_s1  }
  0x1e   : > { %s390_s18 = sshll.u32 %s1699_s12, 4  ;;  %s1700_s27 = smov [#allocation7]   ;;  %s391_s18 = int_to_ptr.vmem [resolvable:$true] %s390_s18 }
  0x1f   : > { %1326 = dma.hbm_to_vmem [thread:$0]  (!%p1812_p6), %s389_s20, 1024, %s391_s18, [#allocation12], %s1697_s30, %s1697_s30, %s1698_s1  }
  0x20   : > { %s354_s6 = sshll.u32 %s2029_s3, 4  ;;  %s356_s13 = sshll.u32 %s1700_s27, 4  ;;  %s355_s6 = int_to_ptr.hbm [resolvable:$true] %s354_s6  ;;  %s357_s13 = int_to_ptr.vmem [resolvable:$true] %s356_s13 }
  0x21   : > { %s2030_s10 = sld [smem:[#allocation30_spill]]  ;;  %s1701_s12 = smov [#allocation13]  }
  0x22   : > { %1320 = dma.hbm_to_vmem [thread:$0]  (!%p1812_p6), %s355_s6, 1024, %s357_s13, [#allocation6], %s1697_s30, %s1697_s30, %s1698_s1  }
  0x23   : > { %s407_s26 = sshll.u32 %s1701_s12, 4  ;;  %s1095_s20 = sadd.s32 4294967294, %s1693_s24   ;;  %s408_s26 = int_to_ptr.vmem [resolvable:$true] %s407_s26 }
  0x24   : > { %s1837_s14 = sadd.s32 1, %s1693_s24   ;;  %s40_s15 = sadd.s32 1, %s1689_s23 }
  0x25   : > { %2031 = sst [smem:[#allocation22_spill]] %s1837_s14  ;;  %s37_s18 = ssub.s32 %s1693_s24, %s1837_s14 }
  0x26   : > { %p47_p7 = scmp.ne.s32.totalorder %s1689_s23, %s1685_s22  ;;  %p38_p8 = scmp.eq.s32.totalorder %s37_s18, 0 }
  0x27   : > { %s405_s25 = sshll.u32 %s2030_s10, 4  ;;  %p48_p9 = scmp.eq.s32.totalorder %s1693_s24, 0  ;;  %s406_s25 = int_to_ptr.hbm [resolvable:$true] %s405_s25 }
  0x28   : > { %1329 = dma.hbm_to_vmem [thread:$0]  (!%p1812_p6), %s406_s25, 1024, %s408_s26, [#allocation12], %s1697_s30, %s1697_s30, %s1698_s1  }
  0x29   : > { %p53_p10 = scmp.ne.s32.totalorder %s1685_s22, %s1681_s21  ;;  %p313_p11 = scmp.eq.s32.totalorder %s1795_s28, 1 }
  0x2a   : > { %s1849_s6 = scalar_select %p38_p8, %s1689_s23, %s40_s15  }
  0x2b   : > { %p1851_p12 = por %p48_p9, %p47_p7  ;;  %p1857_p13 = por %p54_p1, %p53_p10 }
  0x2c   : > { %2032 = sst [smem:[#allocation23_spill]] %s1849_s6  ;;  %p1861_p0 = por %p313_p11, %p47_p7 }
  0x2d   : > { %p319_p2 = scmp.eq.s32.totalorder %s1095_s20, 1  ;;  %p1346_p4 = scmp.lt.s32.totalorder %s1693_s24, 2 }
  0x2e   : > { %s424_s30 = sand.u32 1, %s1689_s23   ;;  %s1253_s19 = sshll.u32 %s1693_s24, 4 }
  0x2f   : > { %p1867_p6 = por %p319_p2, %p53_p10  ;;  %s1871_s16 = sshll.u32 %s424_s30, 4 }
  0x30   : > { %s2038_s0 = sld [smem:[#allocation25_spill]]  ;;  %s428_s18 = scalar_lea.vmem [#allocation2], %s1871_s16 }
  0x31   : > { %s2036_s13 = scalar_select %p1867_p6, 1, 0 }
  0x32   : > { %s436_s3 = sshll.u32 %s428_s18, 4  ;;  %p1880_p7 = pnand %p1346_p4, %p1851_p12  ;;  %s437_s3 = int_to_ptr.vmem [resolvable:$true] %s436_s3 }
  0x33   : > { %2037 = sst [smem:[#allocation24_spill]] %s2036_s13  ;;  %s455_s6 = scalar_lea.hbm %s2003_s5, %s1253_s19 }
  0x34   : > { %s425_s23 = scalar_lea.sflag [#allocation3], %s424_s30  ;;  %p1555_p9 = pneg %p1880_p7 }
  0x36   : > { %s433_s26 = scalar_lea.hbm %s2038_s0, %s1253_s19 }
  0x37   : > { %s434_s15 = sshll.u32 %s433_s26, 4  ;;  %s1558_s26 = scalar_lea.hbm %s2038_s0, 32  ;;  %s435_s15 = int_to_ptr.hbm [resolvable:$true] %s434_s15 }
  0x38   : > { %s1551_s14 = sshra.s32 %s435_s15, 4  ;;  %s1552_s14 = int_to_ptr.hbm [resolvable:$true] %s1551_s14 }
  0x39   : > { %s1553_s25 = scalar_lea.hbm %s1552_s14, 16  ;;  %p1559_p12 = scmp.lt.s32.totalorder %s1552_s14, %s2038_s0 }
  0x3a   : > { %p1554_p8 = scmp.ne.s32.totalorder %s1552_s14, %s1553_s25  ;;  %p1560_p2 = scmp.lt.s32.totalorder %s1558_s26, %s1553_s25 }
  0x3c   : > { %p1556_p10 = pnand %p1555_p9, %p1554_p8  ;;  %p1561_p4 = por %p1560_p2, %p1559_p12 }
  0x3e   : > { %p1557_p11 = pneg %p1556_p10 }
  0x40   : > { %p1562_p5 = pnand %p1561_p4, %p1557_p11 }
  0x42   : > { %1565 = shalt.err (!%p1562_p5)
}
  0x43   : > { %s1702_s10 = smov 128   ;;  %s1703_s30 = smov 8  }
  0x44   : > { %1333 = dma.hbm_to_vmem [thread:$0]  (!%p1880_p7), %s435_s15, 256, %s437_s3, %s425_s23, %s1702_s10, %s1702_s10, %s1703_s30  }
  0x45   : > { %s456_s19 = sshll.u32 %s455_s6, 4  ;;  %s450_s13 = scalar_lea.vmem [#allocation8], %s1871_s16  ;;  %s457_s19 = int_to_ptr.hbm [resolvable:$true] %s456_s19 }
  0x46   : > { %s458_s27 = sshll.u32 %s450_s13, 4  ;;  %s446_s12 = sand.u32 1, %s1693_s24   ;;  %s459_s27 = int_to_ptr.vmem [resolvable:$true] %s458_s27 }
  0x47   : > { %s447_s18 = scalar_lea.sflag [#allocation9], %s446_s12  ;;  %s1581_s14 = sshra.s32 %s457_s19, 4  ;;  %s1582_s14 = int_to_ptr.hbm [resolvable:$true] %s1581_s14 }
  0x48   : > { %s1583_s25 = scalar_lea.hbm %s1582_s14, 16  ;;  %s1588_s0 = scalar_lea.hbm %s2003_s5, 32 }
  0x49   : > { %p1584_p8 = scmp.ne.s32.totalorder %s1582_s14, %s1583_s25  ;;  %p1589_p11 = scmp.lt.s32.totalorder %s1582_s14, %s2003_s5 }
  0x4a   : > { %p1590_p12 = scmp.lt.s32.totalorder %s1588_s0, %s1583_s25 }
  0x4b   : > { %p1586_p5 = pnand %p1584_p8, %p1555_p9 }
  0x4c   : > { %p1591_p2 = por %p1590_p12, %p1589_p11 }
  0x4d   : > { %p1587_p10 = pneg %p1586_p5 }
  0x4f   : > { %p1592_p4 = pnand %p1591_p2, %p1587_p10 }
  0x51   : > { %1595 = shalt.err (!%p1592_p4)
}
  0x52   : > { %1336 = dma.hbm_to_vmem [thread:$0]  (!%p1880_p7), %s457_s19, 256, %s459_s27, %s447_s18, %s1702_s10, %s1702_s10, %s1703_s30  }
  0x53   : > { %470 = sbr.rel (%p1800_p3) target bundleno = 564 (0x234), region = 68  ;;  %s1916_s6 = sand.u32 (!%p1800_p3), 1, %s1685_s22  }
  0x54   : > { %s1919_s13 = sshll.u32 (!%p1800_p3), %s1916_s6, 4  ;;  %s473_s16 = scalar_lea.sflag (!%p1800_p3), [#allocation3], %s1916_s6 }
  0x55   : > { %s476_s0 = scalar_lea.vmem (!%p1800_p3), [#allocation2], %s1919_s13 }
  0x58   : > { %1656 = dma.done.wait (%p1857_p13), %s473_s16, 256  }
  0x59   : > { %1658 = vsyncadd (%p1857_p13), %s473_s16, 4294967040 }
  0x5a   : > { %1660 = dma.done.wait (%p54_p1), [#allocation6], 1536  }
  0x5b   : > { %1662 = vsyncadd (%p54_p1), [#allocation6], 4294965760  ;;  %s492_s29 = sand.u32 1, %s1795_s28   ;;  %s496_s20 = scalar_lea.vmem [#allocation8], %s1919_s13 }
  0x5c   : > { %s493_s15 = scalar_lea.sflag [#allocation9], %s492_s29 }
  0x5d   : > { %1664 = dma.done.wait (%p1857_p13), %s493_s15, 256  }
  0x5e   : > { %1666 = vsyncadd (%p1857_p13), %s493_s15, 4294967040 }
  0x5f   : > { %1668 = dma.done.wait (%p54_p1), [#allocation9], 512  }
  0x60   : > { %1670 = vsyncadd (%p54_p1), [#allocation9], 4294966784 }
  0x61   : > { %1672 = dma.done.wait (%p54_p1), [#allocation12], 2048  }
  0x62   : > { %1674 = vsyncadd (%p54_p1), [#allocation12], 4294965248  ;;  %v1258_v0 = vld [vmem:[#allocation5 + $0x18] sm:$0xff]  ;;  %v1257_v1 = vld [vmem:[#allocation5 + $0x10] sm:$0xff]  ;;  %vm601_vm0 = vcmask 523264   ;;  %s1287_s8 = sshll.u32 %s1795_s28, 4 }
  0x63   : > { %609 = vmatpush.bf16.msra.mxu2 %v1258_v0  ;;  %v1266_v2 = vld [vmem:[#allocation7 + $0x38] sm:$0xff]  ;;  %v1256_v3 = vld [vmem:[#allocation5 + $0x8] sm:$0xff]  ;;  %v1265_v4 = vld [vmem:[#allocation7 + $0x30] sm:$0xff]  ;;  %s2040_s16 = sld [smem:[#allocation31_spill]]  ;;  %s557_s29 = scalar_lea.vmem [#allocation14], %s1919_s13 }
  0x64   : > { %690 = vmatpush.bf16.msra.mxu1 %v1266_v2  ;;  %v1255_v5 = vld [vmem:[#allocation5] sm:$0xff]  ;;  %v563_v7 = vld [vmem:[%s476_s0 + $0x8] sm:$0xff]  ;;  %v1269_v12 = vld [vmem:[#allocation10 + $0x10] sm:$0xff]  ;;  %s949_s15 = sshll.u32 %s557_s29, 4  ;;  %s937_s1 = scalar_lea.sflag [#allocation4], %s1916_s6  ;;  %s950_s15 = int_to_ptr.vmem [resolvable:$true] %s949_s15 }
  0x65   : > { %v562_v6 = vld [vmem:[%s476_s0] sm:$0xff]  ;;  %v1264_v8 = vld [vmem:[#allocation7 + $0x28] sm:$0xff]  ;;  %v1270_v9 = vld [vmem:[#allocation10 + $0x18] sm:$0xff] }
  0x66   : > { %v564_v10 = vpack.c.bf16 %v563_v7, %v562_v6  ;;  %v1263_v11 = vld [vmem:[#allocation7 + $0x20] sm:$0xff]  ;;  %v1268_v13 = vld [vmem:[#allocation10 + $0x8] sm:$0xff]  ;;  %v1262_v18 = vld [vmem:[#allocation7 + $0x18] sm:$0xff] }
  0x67   : > { %610 = vmatpush.bf16.msra.mxu2 %v1257_v1  ;;  %v1267_v14 = vld [vmem:[#allocation10] sm:$0xff]  ;;  %v707_v16 = vld [vmem:[%s496_s20 + $0x8] sm:$0xff]  ;;  %v1261_v20 = vld [vmem:[#allocation7 + $0x10] sm:$0xff] }
  0x68   : > { %691 = vmatpush.bf16.msra.mxu1 %v1265_v4  ;;  %v706_v15 = vld [vmem:[%s496_s20] sm:$0xff]  ;;  %v1278_v19 = vld [vmem:[#allocation11 + $0x38] sm:$0xff]  ;;  %v1260_v22 = vld [vmem:[#allocation7 + $0x8] sm:$0xff] }
  0x69   : > { %v708_v17 = vpack.c.bf16 %v707_v16, %v706_v15  ;;  %833 = vmatpush.bf16.msra.mxu3 %v1278_v19  ;;  %v1277_v21 = vld [vmem:[#allocation11 + $0x30] sm:$0xff]  ;;  %v1276_v23 = vld [vmem:[#allocation11 + $0x28] sm:$0xff]  ;;  %v1259_v24 = vld [vmem:[#allocation7] sm:$0xff]  ;;  %s948_s0 = scalar_lea.hbm %s2040_s16, %s1287_s8  ;;  %s1631_s13 = scalar_lea.hbm %s2040_s16, 32 }
  0x6a   : > { %v1275_v25 = vld [vmem:[#allocation11 + $0x20] sm:$0xff]  ;;  %v1274_v26 = vld [vmem:[#allocation11 + $0x18] sm:$0xff]  ;;  %v1273_v27 = vld [vmem:[#allocation11 + $0x10] sm:$0xff]  ;;  %s951_s20 = sshll.u32 %s948_s0, 4  ;;  %s952_s20 = int_to_ptr.hbm [resolvable:$true] %s951_s20 }
  0x6b   : > { %611 = vmatpush.bf16.msra.mxu2 %v1256_v3  ;;  %v1272_v28 = vld [vmem:[#allocation11 + $0x8] sm:$0xff]  ;;  %v1271_v29 = vld [vmem:[#allocation11] sm:$0xff]  ;;  %v1286_v46 = vld [vmem:[#allocation13 + $0x38] sm:$0xff]  ;;  %s1625_s10 = sshra.s32 %s952_s20, 4  ;;  %s1626_s10 = int_to_ptr.hbm [resolvable:$true] %s1625_s10 }
  0x6c   : > { %692 = vmatpush.bf16.msra.mxu1 %v1264_v8  ;;  %v1396_v31 = vld [vmem:[%s2000_s2] ss:$0 sm:$0xff]  ;;  %920 = vmatpush.bf16.msra.mxu0 %v1286_v46  ;;  %v1285_v47 = vld [vmem:[#allocation13 + $0x30] sm:$0xff]  ;;  %v1284_v48 = vld [vmem:[#allocation13 + $0x28] sm:$0xff]  ;;  %s1627_s28 = scalar_lea.hbm %s1626_s10, 16  ;;  %p1632_p7 = scmp.lt.s32.totalorder %s1626_s10, %s2040_s16 }
  0x6d   : > { %834 = vmatpush.bf16.msra.mxu3 %v1277_v21  ;;  %v1397_v39 = vld [vmem:[%s2005_s7] ss:$0 sm:$0xff]  ;;  %v1282_v50 = vld [vmem:[#allocation13 + $0x18] sm:$0xff]  ;;  %v1281_v51 = vld [vmem:[#allocation13 + $0x10] sm:$0xff]  ;;  %p1628_p1 = scmp.ne.s32.totalorder %s1626_s10, %s1627_s28  ;;  %p1633_p9 = scmp.lt.s32.totalorder %s1631_s13, %s1627_s28 }
  0x6e   : > { %v1283_v49 = vld [vmem:[#allocation13 + $0x20] sm:$0xff]  ;;  %v1280_v52 = vld [vmem:[#allocation13 + $0x8] sm:$0xff] }
  0x6f   : > { %612 = vmatpush.bf16.msra.mxu2 %v1255_v5  ;;  %v1279_v53 = vld [vmem:[#allocation13] sm:$0xff]  ;;  %p1629_p3 = pnand %p1628_p1, %p1861_p0  ;;  %p1634_p8 = por %p1633_p9, %p1632_p7 }
  0x70   : > { %693 = vmatpush.bf16.msra.mxu1 %v1263_v11  ;;  %921 = vmatpush.bf16.msra.mxu0 %v1285_v47  ;;  %v1399_v56 = vld [vmem:[%s2007_s9] ss:$0 sm:$0xff] }
  0x71   : > { %835 = vmatpush.bf16.msra.mxu3 %v1276_v23  ;;  %v1398_v57 = vld [vmem:[%s2002_s4] ss:$0 sm:$0xff]  ;;  %p1630_p13 = pneg %p1629_p3 }
  0x72   : > { %1134 = vmatmul.msk.bf16.vlgmr.msra.gmra.mxu2 %vm601_vm0, %v564_v10  ;;  %v1400_v7 = vld [vmem:[%s2009_s11] ss:$0 sm:$0xff] }
  0x73   : > { %752 = vmatpush.bf16.msrb.mxu2 %v1270_v9  ;;  %p1635_p5 = pnand %p1634_p8, %p1630_p13 }
  0x74   : > { %694 = vmatpush.bf16.msra.mxu1 %v1262_v18  ;;  %922 = vmatpush.bf16.msra.mxu0 %v1284_v48 }
  0x75   : > { %836 = vmatpush.bf16.msra.mxu3 %v1275_v25 }
  0x77   : > { %753 = vmatpush.bf16.msrb.mxu2 %v1269_v12 }
  0x78   : > { %695 = vmatpush.bf16.msra.mxu1 %v1261_v20  ;;  %923 = vmatpush.bf16.msra.mxu0 %v1283_v49 }
  0x79   : > { %837 = vmatpush.bf16.msra.mxu3 %v1274_v26 }
  0x7b   : > { %754 = vmatpush.bf16.msrb.mxu2 %v1268_v13 }
  0x7c   : > { %696 = vmatpush.bf16.msra.mxu1 %v1260_v22  ;;  %924 = vmatpush.bf16.msra.mxu0 %v1282_v50 }
  0x7d   : > { %838 = vmatpush.bf16.msra.mxu3 %v1273_v27 }
  0x7f   : > { %755 = vmatpush.bf16.msrb.mxu2 %v1267_v14 }
  0x80   : > { %697 = vmatpush.bf16.msra.mxu1 %v1259_v24  ;;  %925 = vmatpush.bf16.msra.mxu0 %v1281_v51 }
  0x81   : > { %839 = vmatpush.bf16.msra.mxu3 %v1272_v28 }
  0x82   : > { %1183 = vmatmul.msk.bf16.vlgmr.msrb.gmra.mxu2 %vm601_vm0, %v708_v17 }
  0x84   : > { %926 = vmatpush.bf16.msra.mxu0 %v1280_v52 }
  0x85   : > { %840 = vmatpush.bf16.msra.mxu3 %v1271_v29 }
  0x88   : > { %927 = vmatpush.bf16.msra.mxu0 %v1279_v53 }
  0xf5   : > { %v614_v30 = vpop.f32.mrf.mxu2 }
  0xf6   : > { %v615_v32 = vadd.f32 %v1396_v31, %v614_v30 }
  0xf8   : > { %v619_v35 = vmax.f32 %v615_v32, 0.0 }
  0xfd   : > { %v616_v33 = vpop.f32.mrf.mxu2 }
  0xfe   : > { %v617_v34 = vadd.f32 %v1396_v31, %v616_v33 }
 0x100   : > { %v620_v36 = vmax.f32 %v617_v34, 0.0 }
 0x102   : > { %v621_v37 = vpack.c.bf16 %v620_v36, %v619_v35 }
 0x104   : > { %698 = vmatmul.bf16.vlgmr.msra.gmra.mxu1 %v621_v37 }
 0x105   : > { %v757_v38 = vpop.f32.mrf.mxu2 }
 0x106   : > { %v758_v40 = vadd.f32 %v1397_v39, %v757_v38 }
 0x108   : > { %v762_v43 = vmax.f32 %v758_v40, 0.0 }
 0x10d   : > { %v759_v41 = vpop.f32.mrf.mxu2 }
 0x10e   : > { %v760_v42 = vadd.f32 %v1397_v39, %v759_v41 }
 0x110   : > { %v763_v44 = vmax.f32 %v760_v42, 0.0 }
 0x112   : > { %v764_v45 = vpack.c.bf16 %v763_v44, %v762_v43 }
 0x114   : > { %841 = vmatmul.bf16.vlgmr.msra.gmra.mxu3 %v764_v45 }
 0x181   : > { %v699_v54 = vpop.f32.mrf.mxu1 }
 0x182   : > { %v700_v60 = vadd.f32 %v1398_v57, %v699_v54 }
 0x184   : > { %v704_v1 = vmax.f32 %v700_v60, 0.0 }
 0x189   : > { %v701_v58 = vpop.f32.mrf.mxu1 }
 0x18a   : > { %v702_v61 = vadd.f32 %v1398_v57, %v701_v58 }
 0x18c   : > { %v705_v2 = vmax.f32 %v702_v61, 0.0 }
 0x197   : > { %v842_v55 = vpop.f32.mrf.mxu3 }
 0x198   : > { %v843_v59 = vadd.f32 %v1399_v56, %v842_v55 }
 0x19a   : > { %v847_v63 = vmax.f32 %v843_v59, 0.0 }
 0x19c   : > { %v849_v4 = vmul.f32 %v847_v63, %v704_v1 }
 0x19f   : > { %v844_v62 = vpop.f32.mrf.mxu3 }
 0x1a0   : > { %v845_v0 = vadd.f32 %v1399_v56, %v844_v62 }
 0x1a2   : > { %v848_v3 = vmax.f32 %v845_v0, 0.0 }
 0x1a4   : > { %v850_v5 = vmul.f32 %v848_v3, %v705_v2 }
 0x1a6   : > { %v851_v6 = vpack.c.bf16 %v850_v5, %v849_v4 }
 0x1a8   : > { %928 = vmatmul.bf16.vlgmr.msra.gmra.mxu0 %v851_v6 }
 0x225   : > { %v929_v8 = vpop.f32.mrf.mxu0 }
 0x226   : > { %v930_v9 = vadd.f32 %v1400_v7, %v929_v8 }
 0x228   : > { %934 = vst [vmem:[%s557_s29] sm:$0xff] %v930_v9 }
 0x22d   : > { %v931_v10 = vpop.f32.mrf.mxu0 }
 0x22e   : > { %v932_v11 = vadd.f32 %v1400_v7, %v931_v10 }
 0x230   : > { %935 = vst [vmem:[%s557_s29 + $0x8] sm:$0xff] %v932_v11 }
 0x231   : > { %1638 = shalt.err (!%p1635_p5)
}
 0x232   : > { %s1704_s6 = smov 128   ;;  %s1705_s18 = smov 8  }
 0x233   : > { %1312 = dma.vmem_to_hbm [thread:$0]  (%p1861_p0), %s950_s15, 256, %s952_s20, %s937_s1, %s1704_s6, %s1704_s6, %s1705_s18  }
 0x234 PF: > { %s966_s25 = sand.u32 1, %s1681_s21   ;;  %p2042_p10 = scmp.ge.s32.totalorder %s1693_s24, 2 }
 0x235   : > { %s967_s26 = scalar_lea.sflag [#allocation4], %s966_s25 }
 0x236   : > { %p1338_p11 = pnand %p2042_p10, %p1867_p6 }
 0x238   : > { %p1339_p12 = pneg %p1338_p11 }
 0x23a   : > { %1676 = dma.done.wait (%p1339_p12), %s967_s26, 256  }
 0x23b   : > { %1678 = vsyncadd (%p1339_p12), %s967_s26, 4294967040  ;;  %s2043_s24 = sld [smem:[#allocation22_spill]]  ;;  %s2046_s21 = smov %s1685_s22 }
 0x23c   : > { %s2044_s8 = sld [smem:[#allocation21_spill]] }
 0x23d   : > { %s2045_s23 = sld [smem:[#allocation23_spill]] }
 0x241   : > { %p30_p2 = scmp.ge.s32.totalorder %s2043_s24, 4  }
 0x242   : > { %s2047_s22 = smov %s2044_s8 }
 0x243   :  { %32 = sbr.rel (!%p30_p2) target bundleno = 17 (0x11), region = 146 }
 0x248   :  { %973 = vsyncpa [#allocation3], 1 }
 0x249   :  { %975 = vsyncpa [#allocation3 + $0x1], 1 }
 0x24a   :  { %976 = vsyncpa [#allocation6], 1 }
 0x24b   :  { %977 = vsyncpa [#allocation9], 1 }
 0x24c   :  { %979 = vsyncpa [#allocation9 + $0x1], 1 }
 0x24d   :  { %980 = vsyncpa [#allocation12], 1 }
 0x24e   :  { %981 = vsyncpa [#allocation4], 1 }
 0x24f   :  { %983 = vsyncpa [#allocation4 + $0x1], 1 }

</bundles_post_ra>
